<compile_context>
chip_gen: v6e
topology: v6e:2x2x1
jax: 0.10.0
libtpu: 0.0.40
codegen_flags: <defaults>
</compile_context>

<pallas_src>
import math
from functools import partial

import numpy as np
import jax
import jax.numpy as jnp
from jax import lax
from jax.experimental import pallas as pl
from jax.experimental.pallas import tpu as pltpu

# ----------------------------- synthetic config ------------------------------
# language model
VOCAB = 160
HID = 32
N_HEADS = 4
N_KV = 2
HEAD_DIM = HID // N_HEADS          # 8
INTER = 64
N_LAYERS = 2
MROPE_SECTION = [2, 1, 1]          # sums to HEAD_DIM // 2
ROPE_THETA = 10000.0
EPS = 1e-6
IMAGE_TOKEN_ID = 151
VIDEO_TOKEN_ID = 152
VISION_START_TOKEN_ID = 150

# vision transformer
V_IN = 3
V_TPATCH = 2
V_PATCH = 4
V_PATCH_DIM = V_IN * V_TPATCH * V_PATCH * V_PATCH   # 96
V_HID = 32
V_HEADS = 2
V_HEAD_DIM = V_HID // V_HEADS      # 16
V_INTER = 64
V_DEPTH = 2
MERGE = 2                          # spatial_merge_size
V_OUT = HID                        # out_hidden_size == language hidden
TOKENS_PER_SECOND = 2

QD = N_HEADS * HEAD_DIM                        # 32
KD = N_KV * HEAD_DIM                           # 16
GROUP = N_HEADS // N_KV                        # 2
QKV_DIM = QD + 2 * KD                          # 64 (fused q|k|v)
QKV_PAD = 128                                  # lane-dense qkv output
V_QKV_PAD = 128                                # lane-dense vit qkv output (3*V_HID=96 -> 128)
MERGE_DIM = V_HID * MERGE * MERGE              # 128
VOCAB_PAD = ((VOCAB + 127) // 128) * 128       # 256 (lane-dense lm_head output)

BF16 = jnp.bfloat16


# --------------------------- in-kernel helper math ----------------------------
def _bf(x):
    return x.astype(BF16)


def _rms(x, w, eps):
    var = jnp.mean(x * x, axis=-1, keepdims=True)
    return x * lax.rsqrt(var + eps) * w


def _softmax(s):
    m = jnp.max(s, axis=-1, keepdims=True)
    e = jnp.exp(s - m)
    # denominator reciprocal on the EUP slot (free) instead of a VALU divide
    return e * pl.reciprocal(jnp.sum(e, axis=-1, keepdims=True), approx=True)


def make_rot_half_matrix(width, head_dim):
    """Block-diagonal signed permutation R so that x @ R == rotate_half(x) per head."""
    R = np.zeros((width, width), np.float32)
    half = head_dim // 2
    for h0 in range(0, width, head_dim):
        for c in range(half):
            R[h0 + half + c, h0 + c] = -1.0     # out[c]       = -x[c + half]
            R[h0 + c, h0 + half + c] = 1.0      # out[half+c]  =  x[c]
    return jnp.asarray(R)


# ----------------- fused LM stack kernel (all layers + final head) -------------
def _lm_stack_kernel(x_ref, cos_ref, sin_ref, rq_ref,
                     ln1_ref, qkvw_ref, qkvb_ref, ow_ref, ln2_ref, guw_ref, dw_ref,
                     fn_ref, hw_ref,
                     logits_ref, xs_ref, *, eps):
    l = pl.program_id(1)

    @pl.when(l == 0)
    def _init():
        xs_ref[...] = x_ref[0]                 # load residual stream into VMEM scratch once

    x = xs_ref[...]                            # (Sp, HID) f32, VMEM-resident across layers
    cos_q = cos_ref[0]                         # (Sp, QD) cos tiled per head
    sin_q = sin_ref[0]
    rq = rq_ref[...]                           # (QD, QD) rotate_half matrix
    Sp = x.shape[0]
    scale = 1.0 / math.sqrt(HEAD_DIM)

    # ---- attention ----
    h = _rms(x, ln1_ref[0], eps)
    qkv = jnp.dot(_bf(h), qkvw_ref[0],
                  preferred_element_type=jnp.float32) + qkvb_ref[0]     # (Sp, QKV_PAD)
    q = qkv[:, :QD]
    k = qkv[:, QD:QD + KD]
    v = qkv[:, QD + KD:QD + 2 * KD]

    # RoPE applied once on full-width q / k (rotate_half == block-diag signed perm matmul)
    q = q * cos_q + jnp.dot(q, rq, preferred_element_type=jnp.float32) * sin_q
    cos_k = cos_q[:, :KD]
    sin_k = sin_q[:, :KD]
    k = k * cos_k + jnp.dot(k, rq[:KD, :KD], preferred_element_type=jnp.float32) * sin_k

    row = lax.broadcasted_iota(jnp.int32, (Sp, Sp), 0)
    col = lax.broadcasted_iota(jnp.int32, (Sp, Sp), 1)
    causal = col <= row
    causal_g = jnp.concatenate([causal] * GROUP, axis=0)                # (GROUP*Sp, Sp)

    # TODO(synk): full (Sp, Sp) scores materialized; fine for toy Sp, switch to a KV-tiled
    #             online-softmax loop for non-toy sequence lengths (matters on v7x 64MiB VMEM).
    head_outs = []
    for g in range(N_KV):                                               # unrolled (N_KV = 2)
        # stack the `group` query heads of this KV group along sublanes -> one wide matmul
        qg = jnp.concatenate(
            [q[:, (g * GROUP + j) * HEAD_DIM:(g * GROUP + j + 1) * HEAD_DIM]
             for j in range(GROUP)], axis=0)                            # (GROUP*Sp, HEAD_DIM)
        kg = k[:, g * HEAD_DIM:(g + 1) * HEAD_DIM]
        vg = v[:, g * HEAD_DIM:(g + 1) * HEAD_DIM]
        s = lax.dot_general(_bf(qg), _bf(kg), (((1,), (1,)), ((), ())),
                            preferred_element_type=jnp.float32) * scale
        s = jnp.where(causal_g, s, -1e30)                               # f32 mask value
        p = _softmax(s)
        pv = jnp.dot(_bf(p), _bf(vg),
                     preferred_element_type=jnp.float32)                # (GROUP*Sp, HEAD_DIM)
        for j in range(GROUP):
            head_outs.append(pv[j * Sp:(j + 1) * Sp])                   # sublane-aligned slices
    attn = jnp.concatenate(head_outs, axis=-1)                          # (Sp, QD) head order 0..3
    x = x + jnp.dot(_bf(attn), ow_ref[0], preferred_element_type=jnp.float32)

    # ---- SwiGLU MLP (gate|up fused into one 128-lane matmul) ----
    h2 = _rms(x, ln2_ref[0], eps)
    gu = jnp.dot(_bf(h2), guw_ref[0], preferred_element_type=jnp.float32)   # (Sp, 2*INTER)
    g_ = gu[:, :INTER]
    u_ = gu[:, INTER:]
    act = g_ * jax.nn.sigmoid(g_) * u_
    x = x + jnp.dot(_bf(act), dw_ref[0], preferred_element_type=jnp.float32)

    xs_ref[...] = x

    # ---- fused final RMSNorm + lm_head on the last layer (lane-dense 256-wide store) ----
    @pl.when(l == pl.num_programs(1) - 1)
    def _final():
        hfin = _rms(x, fn_ref[...], eps)
        logits_ref[0] = jnp.dot(_bf(hfin), hw_ref[...],
                                preferred_element_type=jnp.float32)


def lm_forward(lm, input_embeds, position_ids):
    B, S, _ = input_embeds.shape
    Sp = ((S + 15) // 16) * 16                      # pad once, bf16-friendly sublane multiple
    cos, sin = mrope_cos_sin(position_ids)          # (B, S, HEAD_DIM)
    cos_q = jnp.tile(cos, (1, 1, N_HEADS))          # tiled to full Q width once, host-side
    sin_q = jnp.tile(sin, (1, 1, N_HEADS))
    pad = ((0, 0), (0, Sp - S), (0, 0))
    x = jnp.pad(input_embeds, pad)
    cos_q = jnp.pad(cos_q, pad)
    sin_q = jnp.pad(sin_q, pad)

    w = lm["stack"]
    logits = pl.pallas_call(
        partial(_lm_stack_kernel, eps=EPS),
        out_shape=jax.ShapeDtypeStruct((B, Sp, VOCAB_PAD), jnp.float32),
        grid=(B, N_LAYERS),
        in_specs=[
            pl.BlockSpec((1, Sp, HID), lambda b, l: (b, 0, 0)),
            pl.BlockSpec((1, Sp, QD), lambda b, l: (b, 0, 0)),
            pl.BlockSpec((1, Sp, QD), lambda b, l: (b, 0, 0)),
            pl.BlockSpec((QD, QD), lambda b, l: (0, 0)),
            pl.BlockSpec((1, 1, HID), lambda b, l: (l, 0, 0)),
            pl.BlockSpec((1, HID, QKV_PAD), lambda b, l: (l, 0, 0)),
            pl.BlockSpec((1, 1, QKV_PAD), lambda b, l: (l, 0, 0)),
            pl.BlockSpec((1, QD, HID), lambda b, l: (l, 0, 0)),
            pl.BlockSpec((1, 1, HID), lambda b, l: (l, 0, 0)),
            pl.BlockSpec((1, HID, 2 * INTER), lambda b, l: (l, 0, 0)),
            pl.BlockSpec((1, INTER, HID), lambda b, l: (l, 0, 0)),
            pl.BlockSpec((1, HID), lambda b, l: (0, 0)),
            pl.BlockSpec((HID, VOCAB_PAD), lambda b, l: (0, 0)),
        ],
        out_specs=pl.BlockSpec((1, Sp, VOCAB_PAD), lambda b, l: (b, 0, 0)),
        scratch_shapes=[pltpu.VMEM((Sp, HID), jnp.float32)],
        compiler_params=pltpu.CompilerParams(
            dimension_semantics=("parallel", "arbitrary"),
            vmem_limit_bytes=32 * 1024 * 1024),
    )(x, cos_q, sin_q, lm["rot_q"],
      w["in_ln"], w["qkv_w"], w["qkv_b"], w["o_w"], w["post_ln"], w["gu_w"], w["down_w"],
      lm["norm"], lm["lm_head_p"])
    return logits[:, :S, :VOCAB]


# -------- fused vision kernel: patch embed + ViT blocks + PatchMerger ----------
def _vit_kernel(pix_ref, pw_ref, cos_ref, sin_ref, rv_ref,
                n1_ref, qkvw_ref, qkvb_ref, prw_ref, prb_ref,
                n2_ref, guw_ref, gub_ref, dw_ref, db_ref,
                sel_ref, lnq_ref, m0w_ref, m0b_ref, m2w_ref, m2b_ref,
                o_ref, *, eps):
    # patch embed: Conv3d over pre-flattened patches == bias-free linear
    x = jnp.dot(_bf(pix_ref[...]), pw_ref[...],
                preferred_element_type=jnp.float32)                     # (P, V_HID)
    cos_f = cos_ref[...]                                                # (P, V_HID) tiled per head
    sin_f = sin_ref[...]
    rv = rv_ref[...]                                                    # (V_HID, V_HID)
    scale = 1.0 / math.sqrt(V_HEAD_DIM)

    # TODO(synk): Qwen2.5-VL window attention / cu_seqlens per-image masking not modeled;
    #             full bidirectional attention over all patches is used.
    for d in range(V_DEPTH):                                            # fully unrolled
        h = _rms(x, n1_ref[d], eps)
        qkv = jnp.dot(_bf(h), qkvw_ref[d],
                      preferred_element_type=jnp.float32) + qkvb_ref[d]  # (P, V_QKV_PAD)
        q = qkv[:, :V_HID]
        k = qkv[:, V_HID:2 * V_HID]
        v = qkv[:, 2 * V_HID:3 * V_HID]
        # full-width RoPE, rotate_half as block-diag signed permutation matmul
        q = q * cos_f + jnp.dot(q, rv, preferred_element_type=jnp.float32) * sin_f
        k = k * cos_f + jnp.dot(k, rv, preferred_element_type=jnp.float32) * sin_f
        heads = []
        for hh in range(V_HEADS):                                       # unrolled (V_HEADS = 2)
            qh = q[:, hh * V_HEAD_DIM:(hh + 1) * V_HEAD_DIM]
            kh = k[:, hh * V_HEAD_DIM:(hh + 1) * V_HEAD_DIM]
            vh = v[:, hh * V_HEAD_DIM:(hh + 1) * V_HEAD_DIM]
            s = lax.dot_general(_bf(qh), _bf(kh), (((1,), (1,)), ((), ())),
                                preferred_element_type=jnp.float32) * scale
            p = _softmax(s)
            heads.append(jnp.dot(_bf(p), _bf(vh), preferred_element_type=jnp.float32))
        attn = jnp.concatenate(heads, axis=-1)                          # (P, V_HID)
        x = x + jnp.dot(_bf(attn), prw_ref[d],
                        preferred_element_type=jnp.float32) + prb_ref[d]

        h2 = _rms(x, n2_ref[d], eps)
        gu = jnp.dot(_bf(h2), guw_ref[d],
                     preferred_element_type=jnp.float32) + gub_ref[d]   # (P, 2*V_INTER)
        g_ = gu[:, :V_INTER]
        u_ = gu[:, V_INTER:]
        act = g_ * jax.nn.sigmoid(g_) * u_
        x = x + jnp.dot(_bf(act), dw_ref[d],
                        preferred_element_type=jnp.float32) + db_ref[d]

    # PatchMerger: per-patch ln_q RMSNorm, then merge 4 consecutive patches into 128 lanes via
    # selection matmuls (avoids any in-kernel reshape), then 2-layer MLP with GELU.
    xn = _rms(x, lnq_ref[...], eps)                                     # (P, V_HID)
    merged = jnp.concatenate(
        [jnp.dot(sel_ref[j], xn, preferred_element_type=jnp.float32)
         for j in range(MERGE * MERGE)], axis=-1)                       # (G, MERGE_DIM)
    h0 = jnp.dot(_bf(merged), m0w_ref[...],
                 preferred_element_type=jnp.float32) + m0b_ref[...]
    # TODO(synk): PyTorch nn.GELU() is erf-exact; tanh approximation used here.
    c = math.sqrt(2.0 / math.pi)
    gelu = 0.5 * h0 * (1.0 + jnp.tanh(c * (h0 + 0.044715 * h0 * h0 * h0)))
    o_ref[...] = jnp.dot(_bf(gelu), m2w_ref[...],
                         preferred_element_type=jnp.float32) + m2b_ref[...]


def make_merge_selectors(P):
    G = P // (MERGE * MERGE)
    sel = np.zeros((MERGE * MERGE, G, P), np.float32)
    for j in range(MERGE * MERGE):
        for g in range(G):
            sel[j, g, g * MERGE * MERGE + j] = 1.0
    return jnp.asarray(sel)


def vision_forward(vit, pixel_values, grid_thw):
    P = pixel_values.shape[0]
    G = P // (MERGE * MERGE)
    cos, sin = vision_rot_pos_emb(grid_thw)                 # (P, V_HEAD_DIM)
    cos_f = jnp.tile(cos, (1, V_HEADS))                     # (P, V_HID)
    sin_f = jnp.tile(sin, (1, V_HEADS))
    sel = make_merge_selectors(P)
    s, m = vit["stack"], vit["merger"]
    return pl.pallas_call(
        partial(_vit_kernel, eps=EPS),
        out_shape=jax.ShapeDtypeStruct((G, V_OUT), jnp.float32),
        grid=(1,),
        in_specs=[
            pl.BlockSpec((P, V_PATCH_DIM), lambda i: (0, 0)),
            pl.BlockSpec((V_PATCH_DIM, V_HID), lambda i: (0, 0)),
            pl.BlockSpec((P, V_HID), lambda i: (0, 0)),
            pl.BlockSpec((P, V_HID), lambda i: (0, 0)),
            pl.BlockSpec((V_HID, V_HID), lambda i: (0, 0)),
            pl.BlockSpec((V_DEPTH, 1, V_HID), lambda i: (0, 0, 0)),
            pl.BlockSpec((V_DEPTH, V_HID, V_QKV_PAD), lambda i: (0, 0, 0)),
            pl.BlockSpec((V_DEPTH, 1, V_QKV_PAD), lambda i: (0, 0, 0)),
            pl.BlockSpec((V_DEPTH, V_HID, V_HID), lambda i: (0, 0, 0)),
            pl.BlockSpec((V_DEPTH, 1, V_HID), lambda i: (0, 0, 0)),
            pl.BlockSpec((V_DEPTH, 1, V_HID), lambda i: (0, 0, 0)),
            pl.BlockSpec((V_DEPTH, V_HID, 2 * V_INTER), lambda i: (0, 0, 0)),
            pl.BlockSpec((V_DEPTH, 1, 2 * V_INTER), lambda i: (0, 0, 0)),
            pl.BlockSpec((V_DEPTH, V_INTER, V_HID), lambda i: (0, 0, 0)),
            pl.BlockSpec((V_DEPTH, 1, V_HID), lambda i: (0, 0, 0)),
            pl.BlockSpec((MERGE * MERGE, G, P), lambda i: (0, 0, 0)),
            pl.BlockSpec((1, V_HID), lambda i: (0, 0)),
            pl.BlockSpec((MERGE_DIM, MERGE_DIM), lambda i: (0, 0)),
            pl.BlockSpec((1, MERGE_DIM), lambda i: (0, 0)),
            pl.BlockSpec((MERGE_DIM, V_OUT), lambda i: (0, 0)),
            pl.BlockSpec((1, V_OUT), lambda i: (0, 0)),
        ],
        out_specs=pl.BlockSpec((G, V_OUT), lambda i: (0, 0)),
        compiler_params=pltpu.CompilerParams(
            dimension_semantics=("arbitrary",),
            vmem_limit_bytes=32 * 1024 * 1024),
    )(pixel_values, vit["patch_w"], cos_f, sin_f, vit["rot_v"],
      s["norm1"], s["qkv_w"], s["qkv_b"], s["proj_w"], s["proj_b"],
      s["norm2"], s["gu_w"], s["gu_b"], s["down_w"], s["down_b"],
      sel, m["ln_q"], m["w0"], m["b0"], m["w2"], m["b2"])


# ------------------------------ rope glue (XLA/numpy) ---------------------------
def mrope_cos_sin(position_ids):
    """position_ids: (3, B, S) -> cos/sin (B, S, HEAD_DIM) combined per mrope_section."""
    inv_freq = 1.0 / (ROPE_THETA ** (np.arange(0, HEAD_DIM, 2, dtype=np.float32) / HEAD_DIM))
    freqs = position_ids[..., None].astype(jnp.float32) * jnp.asarray(inv_freq)   # (3,B,S,D/2)
    emb = jnp.concatenate([freqs, freqs], axis=-1)                                # (3,B,S,D)
    cos, sin = jnp.cos(emb), jnp.sin(emb)
    sections = MROPE_SECTION * 2
    idx = np.cumsum(sections)[:-1].tolist()
    cos_m = jnp.concatenate(
        [c[i % 3] for i, c in enumerate(jnp.split(cos, idx, axis=-1))], axis=-1)
    sin_m = jnp.concatenate(
        [s[i % 3] for i, s in enumerate(jnp.split(sin, idx, axis=-1))], axis=-1)
    return cos_m, sin_m                                                            # (B,S,D)


def vision_rot_pos_emb(grid_thw):
    """2D vision rope (merge-window patch order). Returns cos/sin (num_patches, V_HEAD_DIM)."""
    pos_ids = []
    for t, h, w in grid_thw:
        hpos = np.broadcast_to(np.arange(h)[:, None], (h, w))
        hpos = hpos.reshape(h // MERGE, MERGE, w // MERGE, MERGE).transpose(0, 2, 1, 3).reshape(-1)
        wpos = np.broadcast_to(np.arange(w)[None, :], (h, w))
        wpos = wpos.reshape(h // MERGE, MERGE, w // MERGE, MERGE).transpose(0, 2, 1, 3).reshape(-1)
        p = np.stack([hpos, wpos], axis=-1)
        pos_ids.append(np.tile(p, (t, 1)))
    pos_ids = np.concatenate(pos_ids, axis=0)                  # (P, 2)
    max_grid = int(pos_ids.max()) + 1
    dim = V_HEAD_DIM // 2
    inv_freq = 1.0 / (10000.0 ** (np.arange(0, dim, 2, dtype=np.float32) / dim))
    freqs = np.outer(np.arange(max_grid, dtype=np.float32), inv_freq)   # (max, dim/2)
    rot = freqs[pos_ids].reshape(pos_ids.shape[0], -1)                  # (P, V_HEAD_DIM/2)
    emb = np.concatenate([rot, rot], axis=-1)                           # (P, V_HEAD_DIM)
    return jnp.asarray(np.cos(emb), jnp.float32), jnp.asarray(np.sin(emb), jnp.float32)


# ---------------------------- get_rope_index (host glue) -----------------------
def get_rope_index_np(input_ids, image_grid_thw):
    """Faithful image-only path of Qwen2_5_VL_LanguageModel.get_rope_index (attention_mask=None)."""
    B, S = input_ids.shape
    position_ids = np.ones((3, B, S), dtype=np.int64)
    image_index = 0
    for i in range(B):
        ids = input_ids[i]
        vstart = np.where(ids == VISION_START_TOKEN_ID)[0]
        vtok = ids[vstart + 1]
        image_nums = int((vtok == IMAGE_TOKEN_ID).sum())
        toks = ids.tolist()
        llm_pos, st = [], 0
        for _ in range(image_nums):
            ed = toks.index(IMAGE_TOKEN_ID, st)
            t, h, w = [int(v) for v in image_grid_thw[image_index]]
            image_index += 1
            lt, lh, lw = t, h // MERGE, w // MERGE
            text_len = ed - st
            st_idx = llm_pos[-1].max() + 1 if llm_pos else 0
            llm_pos.append(np.tile(np.arange(text_len), (3, 1)) + st_idx)
            # images: second_per_grid_t == 0 -> temporal index all zeros
            t_index = np.zeros(lt * lh * lw, dtype=np.int64)
            h_index = np.tile(np.repeat(np.arange(lh), lw), lt)
            w_index = np.tile(np.arange(lw), lt * lh)
            llm_pos.append(np.stack([t_index, h_index, w_index]) + text_len + st_idx)
            st = ed + lt * lh * lw
        if st < len(toks):
            st_idx = llm_pos[-1].max() + 1 if llm_pos else 0
            text_len = len(toks) - st
            llm_pos.append(np.tile(np.arange(text_len), (3, 1)) + st_idx)
        position_ids[:, i, :] = np.concatenate(llm_pos, axis=1)
    return position_ids


# ------------------------------- parameters -----------------------------------
def init_params():
    keys = iter(jax.random.split(jax.random.PRNGKey(0), 512))

    def nrm(shape, scale=0.02, dtype=jnp.float32):
        return (scale * jax.random.normal(next(keys), shape)).astype(dtype)

    def wnrm(shape, scale=0.02):
        return nrm(shape, scale, BF16)        # matmul weights stored in bf16

    params = {}

    # ---- vision ----
    vit = {"patch_w": wnrm((V_PATCH_DIM, V_HID)),
           "rot_v": make_rot_half_matrix(V_HID, V_HEAD_DIM)}
    n1, qkvw, qkvb, prw, prb, n2, guw, gub, dw, db = ([] for _ in range(10))
    for _ in range(V_DEPTH):
        n1.append(jnp.ones((1, V_HID), jnp.float32))
        qkvw.append(jnp.pad(wnrm((V_HID, 3 * V_HID)),
                            ((0, 0), (0, V_QKV_PAD - 3 * V_HID))))
        qkvb.append(jnp.pad(nrm((1, 3 * V_HID)),
                            ((0, 0), (0, V_QKV_PAD - 3 * V_HID))))
        prw.append(wnrm((V_HID, V_HID)))
        prb.append(nrm((1, V_HID)))
        n2.append(jnp.ones((1, V_HID), jnp.float32))
        guw.append(jnp.concatenate([wnrm((V_HID, V_INTER)), wnrm((V_HID, V_INTER))], axis=1))
        gub.append(jnp.concatenate([nrm((1, V_INTER)), nrm((1, V_INTER))], axis=1))
        dw.append(wnrm((V_INTER, V_HID)))
        db.append(nrm((1, V_HID)))
    vit["stack"] = {
        "norm1": jnp.stack(n1), "qkv_w": jnp.stack(qkvw), "qkv_b": jnp.stack(qkvb),
        "proj_w": jnp.stack(prw), "proj_b": jnp.stack(prb), "norm2": jnp.stack(n2),
        "gu_w": jnp.stack(guw), "gu_b": jnp.stack(gub),
        "down_w": jnp.stack(dw), "down_b": jnp.stack(db),
    }
    vit["merger"] = {
        "ln_q": jnp.ones((1, V_HID), jnp.float32),
        "w0": wnrm((MERGE_DIM, MERGE_DIM)), "b0": nrm((1, MERGE_DIM)),
        "w2": wnrm((MERGE_DIM, V_OUT)), "b2": nrm((1, V_OUT)),
    }
    params["vit"] = vit

    # ---- language model ----
    lm = {"embed": nrm((VOCAB, HID)),
          "norm": jnp.ones((1, HID), jnp.float32),
          "lm_head_p": jnp.pad(wnrm((HID, VOCAB)), ((0, 0), (0, VOCAB_PAD - VOCAB))),
          "rot_q": make_rot_half_matrix(QD, HEAD_DIM)}
    ln1s, qkvws, qkvbs, ows, ln2s, guws, dws = ([] for _ in range(7))
    for _ in range(N_LAYERS):
        qw, kw, vw = wnrm((HID, QD)), wnrm((HID, KD)), wnrm((HID, KD))
        qb, kb, vb = nrm((1, QD)), nrm((1, KD)), nrm((1, KD))
        qkvws.append(jnp.pad(jnp.concatenate([qw, kw, vw], axis=1),
                             ((0, 0), (0, QKV_PAD - QKV_DIM))))
        qkvbs.append(jnp.pad(jnp.concatenate([qb, kb, vb], axis=1),
                             ((0, 0), (0, QKV_PAD - QKV_DIM))))
        ln1s.append(jnp.ones((1, HID), jnp.float32))
        ows.append(wnrm((QD, HID)))
        ln2s.append(jnp.ones((1, HID), jnp.float32))
        guws.append(jnp.concatenate([wnrm((HID, INTER)), wnrm((HID, INTER))], axis=1))
        dws.append(wnrm((INTER, HID)))
    lm["stack"] = {
        "in_ln": jnp.stack(ln1s), "qkv_w": jnp.stack(qkvws), "qkv_b": jnp.stack(qkvbs),
        "o_w": jnp.stack(ows), "post_ln": jnp.stack(ln2s),
        "gu_w": jnp.stack(guws), "down_w": jnp.stack(dws),
    }
    params["lm"] = lm
    return params


# ------------------------------- model forward ---------------------------------
def qwen25_vl_forward(params, input_ids_np, pixel_values, image_grid_thw_np):
    lm, vit = params["lm"], params["vit"]
    input_ids = jnp.asarray(input_ids_np)
    text_embeds = jnp.take(lm["embed"], input_ids, axis=0)       # (B, S, HID)
    image_embeds = vision_forward(vit, pixel_values, image_grid_thw_np)

    # masked_scatter of image embeddings into image-token positions (glue; static positions)
    img_pos = np.argwhere(input_ids_np == IMAGE_TOKEN_ID)        # (n_img_tok, 2)
    assert img_pos.shape[0] == image_embeds.shape[0], "num image tokens != num image features"
    input_embeds = text_embeds.at[img_pos[:, 0], img_pos[:, 1]].set(image_embeds)

    position_ids = jnp.asarray(get_rope_index_np(input_ids_np, image_grid_thw_np))
    return lm_forward(lm, input_embeds, position_ids)


# ----------------------------------- main --------------------------------------
if __name__ == "__main__":
    params = init_params()

    # one image: grid (t=1, h=4, w=4) -> 16 patches -> 16 / MERGE^2 = 4 image tokens
    image_grid_thw = np.array([[1, 4, 4]], dtype=np.int64)
    num_patches = int(np.prod(image_grid_thw[0]))
    pixel_values = jax.random.normal(
        jax.random.PRNGKey(0), (num_patches, V_PATCH_DIM), dtype=jnp.float32)

    # batch=1, seq=12 with <vision_start> followed by 4 image placeholder tokens
    input_ids = np.array([[5, 7, VISION_START_TOKEN_ID,
                           IMAGE_TOKEN_ID, IMAGE_TOKEN_ID, IMAGE_TOKEN_ID, IMAGE_TOKEN_ID,
                           9, 11, 13, 17, 19]], dtype=np.int64)

    logits = qwen25_vl_forward(params, input_ids, pixel_values, image_grid_thw)
    logits = jax.block_until_ready(logits)
    assert logits.shape == (1, input_ids.shape[1], VOCAB)
    assert bool(jnp.all(jnp.isfinite(logits)))
    print("KERNEL_OK")
</pallas_src>

<mosaic_0001>
module attributes {stable_mosaic.version = 11 : i64} {
  func.func @_vit_kernel(%arg0: i32, %arg1: memref<16x96xf32, #tpu.memory_space<vmem>>, %arg2: memref<96x32xbf16, #tpu.memory_space<vmem>>, %arg3: memref<16x32xf32, #tpu.memory_space<vmem>>, %arg4: memref<16x32xf32, #tpu.memory_space<vmem>>, %arg5: memref<32x32xf32, #tpu.memory_space<vmem>>, %arg6: memref<2x1x32xf32, #tpu.memory_space<vmem>>, %arg7: memref<2x32x128xbf16, #tpu.memory_space<vmem>>, %arg8: memref<2x1x128xf32, #tpu.memory_space<vmem>>, %arg9: memref<2x32x32xbf16, #tpu.memory_space<vmem>>, %arg10: memref<2x1x32xf32, #tpu.memory_space<vmem>>, %arg11: memref<2x1x32xf32, #tpu.memory_space<vmem>>, %arg12: memref<2x32x128xbf16, #tpu.memory_space<vmem>>, %arg13: memref<2x1x128xf32, #tpu.memory_space<vmem>>, %arg14: memref<2x64x32xbf16, #tpu.memory_space<vmem>>, %arg15: memref<2x1x32xf32, #tpu.memory_space<vmem>>, %arg16: memref<4x4x16xf32, #tpu.memory_space<vmem>>, %arg17: memref<1x32xf32, #tpu.memory_space<vmem>>, %arg18: memref<128x128xbf16, #tpu.memory_space<vmem>>, %arg19: memref<1x128xf32, #tpu.memory_space<vmem>>, %arg20: memref<128x32xbf16, #tpu.memory_space<vmem>>, %arg21: memref<1x32xf32, #tpu.memory_space<vmem>>, %arg22: memref<4x32xf32, #tpu.memory_space<vmem>>) attributes {dimension_semantics = [#tpu.dimension_semantics<arbitrary>], iteration_bounds = array<i64: 1>, scalar_prefetch = 0 : i64, scratch_operands = 0 : i64, tpu.core_type = #tpu.core_type<tc>, window_params = [{pipeline_mode = #tpu.pipeline_mode<synchronous>, transform_indices = @transform_0, window_bounds = array<i64: 16, 96>}, {pipeline_mode = #tpu.pipeline_mode<synchronous>, transform_indices = @transform_1, window_bounds = array<i64: 96, 32>}, {pipeline_mode = #tpu.pipeline_mode<synchronous>, transform_indices = @transform_2, window_bounds = array<i64: 16, 32>}, {pipeline_mode = #tpu.pipeline_mode<synchronous>, transform_indices = @transform_3, window_bounds = array<i64: 16, 32>}, {pipeline_mode = #tpu.pipeline_mode<synchronous>, transform_indices = @transform_4, window_bounds = array<i64: 32, 32>}, {pipeline_mode = #tpu.pipeline_mode<synchronous>, transform_indices = @transform_5, window_bounds = array<i64: 2, 1, 32>}, {pipeline_mode = #tpu.pipeline_mode<synchronous>, transform_indices = @transform_6, window_bounds = array<i64: 2, 32, 128>}, {pipeline_mode = #tpu.pipeline_mode<synchronous>, transform_indices = @transform_7, window_bounds = array<i64: 2, 1, 128>}, {pipeline_mode = #tpu.pipeline_mode<synchronous>, transform_indices = @transform_8, window_bounds = array<i64: 2, 32, 32>}, {pipeline_mode = #tpu.pipeline_mode<synchronous>, transform_indices = @transform_9, window_bounds = array<i64: 2, 1, 32>}, {pipeline_mode = #tpu.pipeline_mode<synchronous>, transform_indices = @transform_10, window_bounds = array<i64: 2, 1, 32>}, {pipeline_mode = #tpu.pipeline_mode<synchronous>, transform_indices = @transform_11, window_bounds = array<i64: 2, 32, 128>}, {pipeline_mode = #tpu.pipeline_mode<synchronous>, transform_indices = @transform_12, window_bounds = array<i64: 2, 1, 128>}, {pipeline_mode = #tpu.pipeline_mode<synchronous>, transform_indices = @transform_13, window_bounds = array<i64: 2, 64, 32>}, {pipeline_mode = #tpu.pipeline_mode<synchronous>, transform_indices = @transform_14, window_bounds = array<i64: 2, 1, 32>}, {pipeline_mode = #tpu.pipeline_mode<synchronous>, transform_indices = @transform_15, window_bounds = array<i64: 4, 4, 16>}, {pipeline_mode = #tpu.pipeline_mode<synchronous>, transform_indices = @transform_16, window_bounds = array<i64: 1, 32>}, {pipeline_mode = #tpu.pipeline_mode<synchronous>, transform_indices = @transform_17, window_bounds = array<i64: 128, 128>}, {pipeline_mode = #tpu.pipeline_mode<synchronous>, transform_indices = @transform_18, window_bounds = array<i64: 1, 128>}, {pipeline_mode = #tpu.pipeline_mode<synchronous>, transform_indices = @transform_19, window_bounds = array<i64: 128, 32>}, {pipeline_mode = #tpu.pipeline_mode<synchronous>, transform_indices = @transform_20, window_bounds = array<i64: 1, 32>}, {pipeline_mode = #tpu.pipeline_mode<synchronous>, transform_indices = @transform_21, window_bounds = array<i64: 4, 32>}]} {
    %c0 = arith.constant 0 : index
    %c0_0 = arith.constant 0 : index
    %0 = vector.load %arg1[%c0, %c0_0] : memref<16x96xf32, #tpu.memory_space<vmem>>, vector<16x96xf32>
    %1 = arith.truncf %0 : vector<16x96xf32> to vector<16x96xbf16>
    %c0_1 = arith.constant 0 : index
    %c0_2 = arith.constant 0 : index
    %2 = vector.load %arg2[%c0_1, %c0_2] : memref<96x32xbf16, #tpu.memory_space<vmem>>, vector<96x32xbf16>
    %cst = arith.constant dense<0.000000e+00> : vector<16x32xf32>
    %3 = tpu.matmul %1, %2, %cst {dimension_numbers = #tpu.dot_dimension_numbers<[1], [0], [0], [1], [0, 0, 1, 1], [], []>} : vector<16x96xbf16>, vector<96x32xbf16>, vector<16x32xf32> -> vector<16x32xf32>
    %c0_3 = arith.constant 0 : index
    %c0_4 = arith.constant 0 : index
    %4 = vector.load %arg3[%c0_3, %c0_4] : memref<16x32xf32, #tpu.memory_space<vmem>>, vector<16x32xf32>
    %c0_5 = arith.constant 0 : index
    %c0_6 = arith.constant 0 : index
    %5 = vector.load %arg4[%c0_5, %c0_6] : memref<16x32xf32, #tpu.memory_space<vmem>>, vector<16x32xf32>
    %c0_7 = arith.constant 0 : index
    %c0_8 = arith.constant 0 : index
    %6 = vector.load %arg5[%c0_7, %c0_8] : memref<32x32xf32, #tpu.memory_space<vmem>>, vector<32x32xf32>
    %c0_9 = arith.constant 0 : index
    %c0_10 = arith.constant 0 : index
    %c0_11 = arith.constant 0 : index
    %7 = vector.load %arg6[%c0_9, %c0_10, %c0_11] : memref<2x1x32xf32, #tpu.memory_space<vmem>>, vector<1x1x32xf32>
    %8 = vector.shape_cast %7 : vector<1x1x32xf32> to vector<1x32xf32>
    %9 = arith.mulf %3, %3 : vector<16x32xf32>
    %cst_12 = arith.constant dense<0.000000e+00> : vector<16xf32>
    %10 = vector.multi_reduction <add>, %9, %cst_12 [1] : vector<16x32xf32> to vector<16xf32>
    %11 = vector.shape_cast %10 : vector<16xf32> to vector<16x1xf32>
    %cst_13 = arith.constant 3.200000e+01 : f32
    %12 = vector.broadcast %cst_13 : f32 to vector<16x1xf32>
    %13 = arith.divf %11, %12 : vector<16x1xf32>
    %cst_14 = arith.constant 9.99999997E-7 : f32
    %14 = vector.broadcast %cst_14 : f32 to vector<16x1xf32>
    %15 = arith.addf %13, %14 : vector<16x1xf32>
    %16 = math.rsqrt %15 : vector<16x1xf32>
    %17 = vector.broadcast %16 : vector<16x1xf32> to vector<16x32xf32>
    %18 = arith.mulf %3, %17 : vector<16x32xf32>
    %19 = vector.broadcast %8 : vector<1x32xf32> to vector<16x32xf32>
    %20 = arith.mulf %18, %19 : vector<16x32xf32>
    %21 = arith.truncf %20 : vector<16x32xf32> to vector<16x32xbf16>
    %c0_15 = arith.constant 0 : index
    %c0_16 = arith.constant 0 : index
    %c0_17 = arith.constant 0 : index
    %22 = vector.load %arg7[%c0_15, %c0_16, %c0_17] : memref<2x32x128xbf16, #tpu.memory_space<vmem>>, vector<1x32x128xbf16>
    %23 = vector.shape_cast %22 : vector<1x32x128xbf16> to vector<32x128xbf16>
    %cst_18 = arith.constant dense<0.000000e+00> : vector<16x128xf32>
    %24 = tpu.matmul %21, %23, %cst_18 {dimension_numbers = #tpu.dot_dimension_numbers<[1], [0], [0], [1], [0, 0, 1, 1], [], []>} : vector<16x32xbf16>, vector<32x128xbf16>, vector<16x128xf32> -> vector<16x128xf32>
    %c0_19 = arith.constant 0 : index
    %c0_20 = arith.constant 0 : index
    %c0_21 = arith.constant 0 : index
    %25 = vector.load %arg8[%c0_19, %c0_20, %c0_21] : memref<2x1x128xf32, #tpu.memory_space<vmem>>, vector<1x1x128xf32>
    %26 = vector.shape_cast %25 : vector<1x1x128xf32> to vector<1x128xf32>
    %27 = vector.broadcast %26 : vector<1x128xf32> to vector<16x128xf32>
    %28 = arith.addf %24, %27 : vector<16x128xf32>
    %29 = vector.extract_strided_slice %28 {offsets = [0, 0], sizes = [16, 32], strides = [1, 1]} : vector<16x128xf32> to vector<16x32xf32>
    %30 = vector.extract_strided_slice %28 {offsets = [0, 32], sizes = [16, 32], strides = [1, 1]} : vector<16x128xf32> to vector<16x32xf32>
    %31 = vector.extract_strided_slice %28 {offsets = [0, 64], sizes = [16, 32], strides = [1, 1]} : vector<16x128xf32> to vector<16x32xf32>
    %32 = arith.mulf %29, %4 : vector<16x32xf32>
    %cst_22 = arith.constant dense<0.000000e+00> : vector<16x32xf32>
    %33 = tpu.matmul %29, %6, %cst_22 {dimension_numbers = #tpu.dot_dimension_numbers<[1], [0], [0], [1], [0, 0, 1, 1], [], []>} : vector<16x32xf32>, vector<32x32xf32>, vector<16x32xf32> -> vector<16x32xf32>
    %34 = arith.mulf %33, %5 : vector<16x32xf32>
    %35 = arith.addf %32, %34 : vector<16x32xf32>
    %36 = arith.mulf %30, %4 : vector<16x32xf32>
    %cst_23 = arith.constant dense<0.000000e+00> : vector<16x32xf32>
    %37 = tpu.matmul %30, %6, %cst_23 {dimension_numbers = #tpu.dot_dimension_numbers<[1], [0], [0], [1], [0, 0, 1, 1], [], []>} : vector<16x32xf32>, vector<32x32xf32>, vector<16x32xf32> -> vector<16x32xf32>
    %38 = arith.mulf %37, %5 : vector<16x32xf32>
    %39 = arith.addf %36, %38 : vector<16x32xf32>
    %40 = vector.extract_strided_slice %35 {offsets = [0, 0], sizes = [16, 16], strides = [1, 1]} : vector<16x32xf32> to vector<16x16xf32>
    %41 = vector.extract_strided_slice %39 {offsets = [0, 0], sizes = [16, 16], strides = [1, 1]} : vector<16x32xf32> to vector<16x16xf32>
    %42 = vector.extract_strided_slice %31 {offsets = [0, 0], sizes = [16, 16], strides = [1, 1]} : vector<16x32xf32> to vector<16x16xf32>
    %43 = arith.truncf %40 : vector<16x16xf32> to vector<16x16xbf16>
    %44 = arith.truncf %41 : vector<16x16xf32> to vector<16x16xbf16>
    %cst_24 = arith.constant dense<0.000000e+00> : vector<16x16xf32>
    %45 = tpu.matmul %43, %44, %cst_24 {dimension_numbers = #tpu.dot_dimension_numbers<[1], [1], [0], [0], [0, 0, 1, 0], [], []>} : vector<16x16xbf16>, vector<16x16xbf16>, vector<16x16xf32> -> vector<16x16xf32>
    %cst_25 = arith.constant 2.500000e-01 : f32
    %46 = vector.broadcast %cst_25 : f32 to vector<16x16xf32>
    %47 = arith.mulf %45, %46 : vector<16x16xf32>
    %cst_26 = arith.constant dense<0xFF800000> : vector<16xf32>
    %48 = vector.multi_reduction <maximumf>, %47, %cst_26 [1] : vector<16x16xf32> to vector<16xf32>
    %49 = vector.shape_cast %48 : vector<16xf32> to vector<16x1xf32>
    %50 = vector.broadcast %49 : vector<16x1xf32> to vector<16x16xf32>
    %51 = arith.subf %47, %50 : vector<16x16xf32>
    %52 = math.exp %51 : vector<16x16xf32>
    %cst_27 = arith.constant dense<0.000000e+00> : vector<16xf32>
    %53 = vector.multi_reduction <add>, %52, %cst_27 [1] : vector<16x16xf32> to vector<16xf32>
    %54 = vector.shape_cast %53 : vector<16xf32> to vector<16x1xf32>
    %55 = tpu.reciprocal %54 {approx = true} : vector<16x1xf32> -> vector<16x1xf32>
    %56 = vector.broadcast %55 : vector<16x1xf32> to vector<16x16xf32>
    %57 = arith.mulf %52, %56 : vector<16x16xf32>
    %58 = arith.truncf %57 : vector<16x16xf32> to vector<16x16xbf16>
    %59 = arith.truncf %42 : vector<16x16xf32> to vector<16x16xbf16>
    %cst_28 = arith.constant dense<0.000000e+00> : vector<16x16xf32>
    %60 = tpu.matmul %58, %59, %cst_28 {dimension_numbers = #tpu.dot_dimension_numbers<[1], [0], [0], [1], [0, 0, 1, 1], [], []>} : vector<16x16xbf16>, vector<16x16xbf16>, vector<16x16xf32> -> vector<16x16xf32>
    %61 = vector.extract_strided_slice %35 {offsets = [0, 16], sizes = [16, 16], strides = [1, 1]} : vector<16x32xf32> to vector<16x16xf32>
    %62 = vector.extract_strided_slice %39 {offsets = [0, 16], sizes = [16, 16], strides = [1, 1]} : vector<16x32xf32> to vector<16x16xf32>
    %63 = vector.extract_strided_slice %31 {offsets = [0, 16], sizes = [16, 16], strides = [1, 1]} : vector<16x32xf32> to vector<16x16xf32>
    %64 = arith.truncf %61 : vector<16x16xf32> to vector<16x16xbf16>
    %65 = arith.truncf %62 : vector<16x16xf32> to vector<16x16xbf16>
    %cst_29 = arith.constant dense<0.000000e+00> : vector<16x16xf32>
    %66 = tpu.matmul %64, %65, %cst_29 {dimension_numbers = #tpu.dot_dimension_numbers<[1], [1], [0], [0], [0, 0, 1, 0], [], []>} : vector<16x16xbf16>, vector<16x16xbf16>, vector<16x16xf32> -> vector<16x16xf32>
    %cst_30 = arith.constant 2.500000e-01 : f32
    %67 = vector.broadcast %cst_30 : f32 to vector<16x16xf32>
    %68 = arith.mulf %66, %67 : vector<16x16xf32>
    %cst_31 = arith.constant dense<0xFF800000> : vector<16xf32>
    %69 = vector.multi_reduction <maximumf>, %68, %cst_31 [1] : vector<16x16xf32> to vector<16xf32>
    %70 = vector.shape_cast %69 : vector<16xf32> to vector<16x1xf32>
    %71 = vector.broadcast %70 : vector<16x1xf32> to vector<16x16xf32>
    %72 = arith.subf %68, %71 : vector<16x16xf32>
    %73 = math.exp %72 : vector<16x16xf32>
    %cst_32 = arith.constant dense<0.000000e+00> : vector<16xf32>
    %74 = vector.multi_reduction <add>, %73, %cst_32 [1] : vector<16x16xf32> to vector<16xf32>
    %75 = vector.shape_cast %74 : vector<16xf32> to vector<16x1xf32>
    %76 = tpu.reciprocal %75 {approx = true} : vector<16x1xf32> -> vector<16x1xf32>
    %77 = vector.broadcast %76 : vector<16x1xf32> to vector<16x16xf32>
    %78 = arith.mulf %73, %77 : vector<16x16xf32>
    %79 = arith.truncf %78 : vector<16x16xf32> to vector<16x16xbf16>
    %80 = arith.truncf %63 : vector<16x16xf32> to vector<16x16xbf16>
    %cst_33 = arith.constant dense<0.000000e+00> : vector<16x16xf32>
    %81 = tpu.matmul %79, %80, %cst_33 {dimension_numbers = #tpu.dot_dimension_numbers<[1], [0], [0], [1], [0, 0, 1, 1], [], []>} : vector<16x16xbf16>, vector<16x16xbf16>, vector<16x16xf32> -> vector<16x16xf32>
    %82 = tpu.concatenate %60, %81 in 1 : vector<16x16xf32>, vector<16x16xf32> -> vector<16x32xf32>
    %83 = arith.truncf %82 : vector<16x32xf32> to vector<16x32xbf16>
    %c0_34 = arith.constant 0 : index
    %c0_35 = arith.constant 0 : index
    %c0_36 = arith.constant 0 : index
    %84 = vector.load %arg9[%c0_34, %c0_35, %c0_36] : memref<2x32x32xbf16, #tpu.memory_space<vmem>>, vector<1x32x32xbf16>
    %85 = vector.shape_cast %84 : vector<1x32x32xbf16> to vector<32x32xbf16>
    %cst_37 = arith.constant dense<0.000000e+00> : vector<16x32xf32>
    %86 = tpu.matmul %83, %85, %cst_37 {dimension_numbers = #tpu.dot_dimension_numbers<[1], [0], [0], [1], [0, 0, 1, 1], [], []>} : vector<16x32xbf16>, vector<32x32xbf16>, vector<16x32xf32> -> vector<16x32xf32>
    %87 = arith.addf %3, %86 : vector<16x32xf32>
    %c0_38 = arith.constant 0 : index
    %c0_39 = arith.constant 0 : index
    %c0_40 = arith.constant 0 : index
    %88 = vector.load %arg10[%c0_38, %c0_39, %c0_40] : memref<2x1x32xf32, #tpu.memory_space<vmem>>, vector<1x1x32xf32>
    %89 = vector.shape_cast %88 : vector<1x1x32xf32> to vector<1x32xf32>
    %90 = vector.broadcast %89 : vector<1x32xf32> to vector<16x32xf32>
    %91 = arith.addf %87, %90 : vector<16x32xf32>
    %c0_41 = arith.constant 0 : index
    %c0_42 = arith.constant 0 : index
    %c0_43 = arith.constant 0 : index
    %92 = vector.load %arg11[%c0_41, %c0_42, %c0_43] : memref<2x1x32xf32, #tpu.memory_space<vmem>>, vector<1x1x32xf32>
    %93 = vector.shape_cast %92 : vector<1x1x32xf32> to vector<1x32xf32>
    %94 = arith.mulf %91, %91 : vector<16x32xf32>
    %cst_44 = arith.constant dense<0.000000e+00> : vector<16xf32>
    %95 = vector.multi_reduction <add>, %94, %cst_44 [1] : vector<16x32xf32> to vector<16xf32>
    %96 = vector.shape_cast %95 : vector<16xf32> to vector<16x1xf32>
    %cst_45 = arith.constant 3.200000e+01 : f32
    %97 = vector.broadcast %cst_45 : f32 to vector<16x1xf32>
    %98 = arith.divf %96, %97 : vector<16x1xf32>
    %cst_46 = arith.constant 9.99999997E-7 : f32
    %99 = vector.broadcast %cst_46 : f32 to vector<16x1xf32>
    %100 = arith.addf %98, %99 : vector<16x1xf32>
    %101 = math.rsqrt %100 : vector<16x1xf32>
    %102 = vector.broadcast %101 : vector<16x1xf32> to vector<16x32xf32>
    %103 = arith.mulf %91, %102 : vector<16x32xf32>
    %104 = vector.broadcast %93 : vector<1x32xf32> to vector<16x32xf32>
    %105 = arith.mulf %103, %104 : vector<16x32xf32>
    %106 = arith.truncf %105 : vector<16x32xf32> to vector<16x32xbf16>
    %c0_47 = arith.constant 0 : index
    %c0_48 = arith.constant 0 : index
    %c0_49 = arith.constant 0 : index
    %107 = vector.load %arg12[%c0_47, %c0_48, %c0_49] : memref<2x32x128xbf16, #tpu.memory_space<vmem>>, vector<1x32x128xbf16>
    %108 = vector.shape_cast %107 : vector<1x32x128xbf16> to vector<32x128xbf16>
    %cst_50 = arith.constant dense<0.000000e+00> : vector<16x128xf32>
    %109 = tpu.matmul %106, %108, %cst_50 {dimension_numbers = #tpu.dot_dimension_numbers<[1], [0], [0], [1], [0, 0, 1, 1], [], []>} : vector<16x32xbf16>, vector<32x128xbf16>, vector<16x128xf32> -> vector<16x128xf32>
    %c0_51 = arith.constant 0 : index
    %c0_52 = arith.constant 0 : index
    %c0_53 = arith.constant 0 : index
    %110 = vector.load %arg13[%c0_51, %c0_52, %c0_53] : memref<2x1x128xf32, #tpu.memory_space<vmem>>, vector<1x1x128xf32>
    %111 = vector.shape_cast %110 : vector<1x1x128xf32> to vector<1x128xf32>
    %112 = vector.broadcast %111 : vector<1x128xf32> to vector<16x128xf32>
    %113 = arith.addf %109, %112 : vector<16x128xf32>
    %114 = vector.extract_strided_slice %113 {offsets = [0, 0], sizes = [16, 64], strides = [1, 1]} : vector<16x128xf32> to vector<16x64xf32>
    %115 = vector.extract_strided_slice %113 {offsets = [0, 64], sizes = [16, 64], strides = [1, 1]} : vector<16x128xf32> to vector<16x64xf32>
    %116 = arith.negf %114 : vector<16x64xf32>
    %117 = math.exp %116 : vector<16x64xf32>
    %cst_54 = arith.constant 1.000000e+00 : f32
    %118 = vector.broadcast %cst_54 : f32 to vector<16x64xf32>
    %119 = arith.addf %118, %117 : vector<16x64xf32>
    %120 = arith.divf %118, %119 : vector<16x64xf32>
    %121 = arith.mulf %114, %120 : vector<16x64xf32>
    %122 = arith.mulf %121, %115 : vector<16x64xf32>
    %123 = arith.truncf %122 : vector<16x64xf32> to vector<16x64xbf16>
    %c0_55 = arith.constant 0 : index
    %c0_56 = arith.constant 0 : index
    %c0_57 = arith.constant 0 : index
    %124 = vector.load %arg14[%c0_55, %c0_56, %c0_57] : memref<2x64x32xbf16, #tpu.memory_space<vmem>>, vector<1x64x32xbf16>
    %125 = vector.shape_cast %124 : vector<1x64x32xbf16> to vector<64x32xbf16>
    %cst_58 = arith.constant dense<0.000000e+00> : vector<16x32xf32>
    %126 = tpu.matmul %123, %125, %cst_58 {dimension_numbers = #tpu.dot_dimension_numbers<[1], [0], [0], [1], [0, 0, 1, 1], [], []>} : vector<16x64xbf16>, vector<64x32xbf16>, vector<16x32xf32> -> vector<16x32xf32>
    %127 = arith.addf %91, %126 : vector<16x32xf32>
    %c0_59 = arith.constant 0 : index
    %c0_60 = arith.constant 0 : index
    %c0_61 = arith.constant 0 : index
    %128 = vector.load %arg15[%c0_59, %c0_60, %c0_61] : memref<2x1x32xf32, #tpu.memory_space<vmem>>, vector<1x1x32xf32>
    %129 = vector.shape_cast %128 : vector<1x1x32xf32> to vector<1x32xf32>
    %130 = vector.broadcast %129 : vector<1x32xf32> to vector<16x32xf32>
    %131 = arith.addf %127, %130 : vector<16x32xf32>
    %c1 = arith.constant 1 : index
    %c0_62 = arith.constant 0 : index
    %c0_63 = arith.constant 0 : index
    %132 = vector.load %arg6[%c1, %c0_62, %c0_63] : memref<2x1x32xf32, #tpu.memory_space<vmem>>, vector<1x1x32xf32>
    %133 = vector.shape_cast %132 : vector<1x1x32xf32> to vector<1x32xf32>
    %134 = arith.mulf %131, %131 : vector<16x32xf32>
    %cst_64 = arith.constant dense<0.000000e+00> : vector<16xf32>
    %135 = vector.multi_reduction <add>, %134, %cst_64 [1] : vector<16x32xf32> to vector<16xf32>
    %136 = vector.shape_cast %135 : vector<16xf32> to vector<16x1xf32>
    %cst_65 = arith.constant 3.200000e+01 : f32
    %137 = vector.broadcast %cst_65 : f32 to vector<16x1xf32>
    %138 = arith.divf %136, %137 : vector<16x1xf32>
    %cst_66 = arith.constant 9.99999997E-7 : f32
    %139 = vector.broadcast %cst_66 : f32 to vector<16x1xf32>
    %140 = arith.addf %138, %139 : vector<16x1xf32>
    %141 = math.rsqrt %140 : vector<16x1xf32>
    %142 = vector.broadcast %141 : vector<16x1xf32> to vector<16x32xf32>
    %143 = arith.mulf %131, %142 : vector<16x32xf32>
    %144 = vector.broadcast %133 : vector<1x32xf32> to vector<16x32xf32>
    %145 = arith.mulf %143, %144 : vector<16x32xf32>
    %146 = arith.truncf %145 : vector<16x32xf32> to vector<16x32xbf16>
    %c1_67 = arith.constant 1 : index
    %c0_68 = arith.constant 0 : index
    %c0_69 = arith.constant 0 : index
    %147 = vector.load %arg7[%c1_67, %c0_68, %c0_69] : memref<2x32x128xbf16, #tpu.memory_space<vmem>>, vector<1x32x128xbf16>
    %148 = vector.shape_cast %147 : vector<1x32x128xbf16> to vector<32x128xbf16>
    %cst_70 = arith.constant dense<0.000000e+00> : vector<16x128xf32>
    %149 = tpu.matmul %146, %148, %cst_70 {dimension_numbers = #tpu.dot_dimension_numbers<[1], [0], [0], [1], [0, 0, 1, 1], [], []>} : vector<16x32xbf16>, vector<32x128xbf16>, vector<16x128xf32> -> vector<16x128xf32>
    %c1_71 = arith.constant 1 : index
    %c0_72 = arith.constant 0 : index
    %c0_73 = arith.constant 0 : index
    %150 = vector.load %arg8[%c1_71, %c0_72, %c0_73] : memref<2x1x128xf32, #tpu.memory_space<vmem>>, vector<1x1x128xf32>
    %151 = vector.shape_cast %150 : vector<1x1x128xf32> to vector<1x128xf32>
    %152 = vector.broadcast %151 : vector<1x128xf32> to vector<16x128xf32>
    %153 = arith.addf %149, %152 : vector<16x128xf32>
    %154 = vector.extract_strided_slice %153 {offsets = [0, 0], sizes = [16, 32], strides = [1, 1]} : vector<16x128xf32> to vector<16x32xf32>
    %155 = vector.extract_strided_slice %153 {offsets = [0, 32], sizes = [16, 32], strides = [1, 1]} : vector<16x128xf32> to vector<16x32xf32>
    %156 = vector.extract_strided_slice %153 {offsets = [0, 64], sizes = [16, 32], strides = [1, 1]} : vector<16x128xf32> to vector<16x32xf32>
    %157 = arith.mulf %154, %4 : vector<16x32xf32>
    %cst_74 = arith.constant dense<0.000000e+00> : vector<16x32xf32>
    %158 = tpu.matmul %154, %6, %cst_74 {dimension_numbers = #tpu.dot_dimension_numbers<[1], [0], [0], [1], [0, 0, 1, 1], [], []>} : vector<16x32xf32>, vector<32x32xf32>, vector<16x32xf32> -> vector<16x32xf32>
    %159 = arith.mulf %158, %5 : vector<16x32xf32>
    %160 = arith.addf %157, %159 : vector<16x32xf32>
    %161 = arith.mulf %155, %4 : vector<16x32xf32>
    %cst_75 = arith.constant dense<0.000000e+00> : vector<16x32xf32>
    %162 = tpu.matmul %155, %6, %cst_75 {dimension_numbers = #tpu.dot_dimension_numbers<[1], [0], [0], [1], [0, 0, 1, 1], [], []>} : vector<16x32xf32>, vector<32x32xf32>, vector<16x32xf32> -> vector<16x32xf32>
    %163 = arith.mulf %162, %5 : vector<16x32xf32>
    %164 = arith.addf %161, %163 : vector<16x32xf32>
    %165 = vector.extract_strided_slice %160 {offsets = [0, 0], sizes = [16, 16], strides = [1, 1]} : vector<16x32xf32> to vector<16x16xf32>
    %166 = vector.extract_strided_slice %164 {offsets = [0, 0], sizes = [16, 16], strides = [1, 1]} : vector<16x32xf32> to vector<16x16xf32>
    %167 = vector.extract_strided_slice %156 {offsets = [0, 0], sizes = [16, 16], strides = [1, 1]} : vector<16x32xf32> to vector<16x16xf32>
    %168 = arith.truncf %165 : vector<16x16xf32> to vector<16x16xbf16>
    %169 = arith.truncf %166 : vector<16x16xf32> to vector<16x16xbf16>
    %cst_76 = arith.constant dense<0.000000e+00> : vector<16x16xf32>
    %170 = tpu.matmul %168, %169, %cst_76 {dimension_numbers = #tpu.dot_dimension_numbers<[1], [1], [0], [0], [0, 0, 1, 0], [], []>} : vector<16x16xbf16>, vector<16x16xbf16>, vector<16x16xf32> -> vector<16x16xf32>
    %cst_77 = arith.constant 2.500000e-01 : f32
    %171 = vector.broadcast %cst_77 : f32 to vector<16x16xf32>
    %172 = arith.mulf %170, %171 : vector<16x16xf32>
    %cst_78 = arith.constant dense<0xFF800000> : vector<16xf32>
    %173 = vector.multi_reduction <maximumf>, %172, %cst_78 [1] : vector<16x16xf32> to vector<16xf32>
    %174 = vector.shape_cast %173 : vector<16xf32> to vector<16x1xf32>
    %175 = vector.broadcast %174 : vector<16x1xf32> to vector<16x16xf32>
    %176 = arith.subf %172, %175 : vector<16x16xf32>
    %177 = math.exp %176 : vector<16x16xf32>
    %cst_79 = arith.constant dense<0.000000e+00> : vector<16xf32>
    %178 = vector.multi_reduction <add>, %177, %cst_79 [1] : vector<16x16xf32> to vector<16xf32>
    %179 = vector.shape_cast %178 : vector<16xf32> to vector<16x1xf32>
    %180 = tpu.reciprocal %179 {approx = true} : vector<16x1xf32> -> vector<16x1xf32>
    %181 = vector.broadcast %180 : vector<16x1xf32> to vector<16x16xf32>
    %182 = arith.mulf %177, %181 : vector<16x16xf32>
    %183 = arith.truncf %182 : vector<16x16xf32> to vector<16x16xbf16>
    %184 = arith.truncf %167 : vector<16x16xf32> to vector<16x16xbf16>
    %cst_80 = arith.constant dense<0.000000e+00> : vector<16x16xf32>
    %185 = tpu.matmul %183, %184, %cst_80 {dimension_numbers = #tpu.dot_dimension_numbers<[1], [0], [0], [1], [0, 0, 1, 1], [], []>} : vector<16x16xbf16>, vector<16x16xbf16>, vector<16x16xf32> -> vector<16x16xf32>
    %186 = vector.extract_strided_slice %160 {offsets = [0, 16], sizes = [16, 16], strides = [1, 1]} : vector<16x32xf32> to vector<16x16xf32>
    %187 = vector.extract_strided_slice %164 {offsets = [0, 16], sizes = [16, 16], strides = [1, 1]} : vector<16x32xf32> to vector<16x16xf32>
    %188 = vector.extract_strided_slice %156 {offsets = [0, 16], sizes = [16, 16], strides = [1, 1]} : vector<16x32xf32> to vector<16x16xf32>
    %189 = arith.truncf %186 : vector<16x16xf32> to vector<16x16xbf16>
    %190 = arith.truncf %187 : vector<16x16xf32> to vector<16x16xbf16>
    %cst_81 = arith.constant dense<0.000000e+00> : vector<16x16xf32>
    %191 = tpu.matmul %189, %190, %cst_81 {dimension_numbers = #tpu.dot_dimension_numbers<[1], [1], [0], [0], [0, 0, 1, 0], [], []>} : vector<16x16xbf16>, vector<16x16xbf16>, vector<16x16xf32> -> vector<16x16xf32>
    %cst_82 = arith.constant 2.500000e-01 : f32
    %192 = vector.broadcast %cst_82 : f32 to vector<16x16xf32>
    %193 = arith.mulf %191, %192 : vector<16x16xf32>
    %cst_83 = arith.constant dense<0xFF800000> : vector<16xf32>
    %194 = vector.multi_reduction <maximumf>, %193, %cst_83 [1] : vector<16x16xf32> to vector<16xf32>
    %195 = vector.shape_cast %194 : vector<16xf32> to vector<16x1xf32>
    %196 = vector.broadcast %195 : vector<16x1xf32> to vector<16x16xf32>
    %197 = arith.subf %193, %196 : vector<16x16xf32>
    %198 = math.exp %197 : vector<16x16xf32>
    %cst_84 = arith.constant dense<0.000000e+00> : vector<16xf32>
    %199 = vector.multi_reduction <add>, %198, %cst_84 [1] : vector<16x16xf32> to vector<16xf32>
    %200 = vector.shape_cast %199 : vector<16xf32> to vector<16x1xf32>
    %201 = tpu.reciprocal %200 {approx = true} : vector<16x1xf32> -> vector<16x1xf32>
    %202 = vector.broadcast %201 : vector<16x1xf32> to vector<16x16xf32>
    %203 = arith.mulf %198, %202 : vector<16x16xf32>
    %204 = arith.truncf %203 : vector<16x16xf32> to vector<16x16xbf16>
    %205 = arith.truncf %188 : vector<16x16xf32> to vector<16x16xbf16>
    %cst_85 = arith.constant dense<0.000000e+00> : vector<16x16xf32>
    %206 = tpu.matmul %204, %205, %cst_85 {dimension_numbers = #tpu.dot_dimension_numbers<[1], [0], [0], [1], [0, 0, 1, 1], [], []>} : vector<16x16xbf16>, vector<16x16xbf16>, vector<16x16xf32> -> vector<16x16xf32>
    %207 = tpu.concatenate %185, %206 in 1 : vector<16x16xf32>, vector<16x16xf32> -> vector<16x32xf32>
    %208 = arith.truncf %207 : vector<16x32xf32> to vector<16x32xbf16>
    %c1_86 = arith.constant 1 : index
    %c0_87 = arith.constant 0 : index
    %c0_88 = arith.constant 0 : index
    %209 = vector.load %arg9[%c1_86, %c0_87, %c0_88] : memref<2x32x32xbf16, #tpu.memory_space<vmem>>, vector<1x32x32xbf16>
    %210 = vector.shape_cast %209 : vector<1x32x32xbf16> to vector<32x32xbf16>
    %cst_89 = arith.constant dense<0.000000e+00> : vector<16x32xf32>
    %211 = tpu.matmul %208, %210, %cst_89 {dimension_numbers = #tpu.dot_dimension_numbers<[1], [0], [0], [1], [0, 0, 1, 1], [], []>} : vector<16x32xbf16>, vector<32x32xbf16>, vector<16x32xf32> -> vector<16x32xf32>
    %212 = arith.addf %131, %211 : vector<16x32xf32>
    %c1_90 = arith.constant 1 : index
    %c0_91 = arith.constant 0 : index
    %c0_92 = arith.constant 0 : index
    %213 = vector.load %arg10[%c1_90, %c0_91, %c0_92] : memref<2x1x32xf32, #tpu.memory_space<vmem>>, vector<1x1x32xf32>
    %214 = vector.shape_cast %213 : vector<1x1x32xf32> to vector<1x32xf32>
    %215 = vector.broadcast %214 : vector<1x32xf32> to vector<16x32xf32>
    %216 = arith.addf %212, %215 : vector<16x32xf32>
    %c1_93 = arith.constant 1 : index
    %c0_94 = arith.constant 0 : index
    %c0_95 = arith.constant 0 : index
    %217 = vector.load %arg11[%c1_93, %c0_94, %c0_95] : memref<2x1x32xf32, #tpu.memory_space<vmem>>, vector<1x1x32xf32>
    %218 = vector.shape_cast %217 : vector<1x1x32xf32> to vector<1x32xf32>
    %219 = arith.mulf %216, %216 : vector<16x32xf32>
    %cst_96 = arith.constant dense<0.000000e+00> : vector<16xf32>
    %220 = vector.multi_reduction <add>, %219, %cst_96 [1] : vector<16x32xf32> to vector<16xf32>
    %221 = vector.shape_cast %220 : vector<16xf32> to vector<16x1xf32>
    %cst_97 = arith.constant 3.200000e+01 : f32
    %222 = vector.broadcast %cst_97 : f32 to vector<16x1xf32>
    %223 = arith.divf %221, %222 : vector<16x1xf32>
    %cst_98 = arith.constant 9.99999997E-7 : f32
    %224 = vector.broadcast %cst_98 : f32 to vector<16x1xf32>
    %225 = arith.addf %223, %224 : vector<16x1xf32>
    %226 = math.rsqrt %225 : vector<16x1xf32>
    %227 = vector.broadcast %226 : vector<16x1xf32> to vector<16x32xf32>
    %228 = arith.mulf %216, %227 : vector<16x32xf32>
    %229 = vector.broadcast %218 : vector<1x32xf32> to vector<16x32xf32>
    %230 = arith.mulf %228, %229 : vector<16x32xf32>
    %231 = arith.truncf %230 : vector<16x32xf32> to vector<16x32xbf16>
    %c1_99 = arith.constant 1 : index
    %c0_100 = arith.constant 0 : index
    %c0_101 = arith.constant 0 : index
    %232 = vector.load %arg12[%c1_99, %c0_100, %c0_101] : memref<2x32x128xbf16, #tpu.memory_space<vmem>>, vector<1x32x128xbf16>
    %233 = vector.shape_cast %232 : vector<1x32x128xbf16> to vector<32x128xbf16>
    %cst_102 = arith.constant dense<0.000000e+00> : vector<16x128xf32>
    %234 = tpu.matmul %231, %233, %cst_102 {dimension_numbers = #tpu.dot_dimension_numbers<[1], [0], [0], [1], [0, 0, 1, 1], [], []>} : vector<16x32xbf16>, vector<32x128xbf16>, vector<16x128xf32> -> vector<16x128xf32>
    %c1_103 = arith.constant 1 : index
    %c0_104 = arith.constant 0 : index
    %c0_105 = arith.constant 0 : index
    %235 = vector.load %arg13[%c1_103, %c0_104, %c0_105] : memref<2x1x128xf32, #tpu.memory_space<vmem>>, vector<1x1x128xf32>
    %236 = vector.shape_cast %235 : vector<1x1x128xf32> to vector<1x128xf32>
    %237 = vector.broadcast %236 : vector<1x128xf32> to vector<16x128xf32>
    %238 = arith.addf %234, %237 : vector<16x128xf32>
    %239 = vector.extract_strided_slice %238 {offsets = [0, 0], sizes = [16, 64], strides = [1, 1]} : vector<16x128xf32> to vector<16x64xf32>
    %240 = vector.extract_strided_slice %238 {offsets = [0, 64], sizes = [16, 64], strides = [1, 1]} : vector<16x128xf32> to vector<16x64xf32>
    %241 = arith.negf %239 : vector<16x64xf32>
    %242 = math.exp %241 : vector<16x64xf32>
    %cst_106 = arith.constant 1.000000e+00 : f32
    %243 = vector.broadcast %cst_106 : f32 to vector<16x64xf32>
    %244 = arith.addf %243, %242 : vector<16x64xf32>
    %245 = arith.divf %243, %244 : vector<16x64xf32>
    %246 = arith.mulf %239, %245 : vector<16x64xf32>
    %247 = arith.mulf %246, %240 : vector<16x64xf32>
    %248 = arith.truncf %247 : vector<16x64xf32> to vector<16x64xbf16>
    %c1_107 = arith.constant 1 : index
    %c0_108 = arith.constant 0 : index
    %c0_109 = arith.constant 0 : index
    %249 = vector.load %arg14[%c1_107, %c0_108, %c0_109] : memref<2x64x32xbf16, #tpu.memory_space<vmem>>, vector<1x64x32xbf16>
    %250 = vector.shape_cast %249 : vector<1x64x32xbf16> to vector<64x32xbf16>
    %cst_110 = arith.constant dense<0.000000e+00> : vector<16x32xf32>
    %251 = tpu.matmul %248, %250, %cst_110 {dimension_numbers = #tpu.dot_dimension_numbers<[1], [0], [0], [1], [0, 0, 1, 1], [], []>} : vector<16x64xbf16>, vector<64x32xbf16>, vector<16x32xf32> -> vector<16x32xf32>
    %252 = arith.addf %216, %251 : vector<16x32xf32>
    %c1_111 = arith.constant 1 : index
    %c0_112 = arith.constant 0 : index
    %c0_113 = arith.constant 0 : index
    %253 = vector.load %arg15[%c1_111, %c0_112, %c0_113] : memref<2x1x32xf32, #tpu.memory_space<vmem>>, vector<1x1x32xf32>
    %254 = vector.shape_cast %253 : vector<1x1x32xf32> to vector<1x32xf32>
    %255 = vector.broadcast %254 : vector<1x32xf32> to vector<16x32xf32>
    %256 = arith.addf %252, %255 : vector<16x32xf32>
    %c0_114 = arith.constant 0 : index
    %c0_115 = arith.constant 0 : index
    %257 = vector.load %arg17[%c0_114, %c0_115] : memref<1x32xf32, #tpu.memory_space<vmem>>, vector<1x32xf32>
    %258 = arith.mulf %256, %256 : vector<16x32xf32>
    %cst_116 = arith.constant dense<0.000000e+00> : vector<16xf32>
    %259 = vector.multi_reduction <add>, %258, %cst_116 [1] : vector<16x32xf32> to vector<16xf32>
    %260 = vector.shape_cast %259 : vector<16xf32> to vector<16x1xf32>
    %cst_117 = arith.constant 3.200000e+01 : f32
    %261 = vector.broadcast %cst_117 : f32 to vector<16x1xf32>
    %262 = arith.divf %260, %261 : vector<16x1xf32>
    %cst_118 = arith.constant 9.99999997E-7 : f32
    %263 = vector.broadcast %cst_118 : f32 to vector<16x1xf32>
    %264 = arith.addf %262, %263 : vector<16x1xf32>
    %265 = math.rsqrt %264 : vector<16x1xf32>
    %266 = vector.broadcast %265 : vector<16x1xf32> to vector<16x32xf32>
    %267 = arith.mulf %256, %266 : vector<16x32xf32>
    %268 = vector.broadcast %257 : vector<1x32xf32> to vector<16x32xf32>
    %269 = arith.mulf %267, %268 : vector<16x32xf32>
    %c0_119 = arith.constant 0 : index
    %c0_120 = arith.constant 0 : index
    %c0_121 = arith.constant 0 : index
    %270 = vector.load %arg16[%c0_119, %c0_120, %c0_121] : memref<4x4x16xf32, #tpu.memory_space<vmem>>, vector<1x4x16xf32>
    %271 = vector.shape_cast %270 : vector<1x4x16xf32> to vector<4x16xf32>
    %cst_122 = arith.constant dense<0.000000e+00> : vector<4x32xf32>
    %272 = tpu.matmul %271, %269, %cst_122 {dimension_numbers = #tpu.dot_dimension_numbers<[1], [0], [0], [1], [0, 0, 1, 1], [], []>} : vector<4x16xf32>, vector<16x32xf32>, vector<4x32xf32> -> vector<4x32xf32>
    %c1_123 = arith.constant 1 : index
    %c0_124 = arith.constant 0 : index
    %c0_125 = arith.constant 0 : index
    %273 = vector.load %arg16[%c1_123, %c0_124, %c0_125] : memref<4x4x16xf32, #tpu.memory_space<vmem>>, vector<1x4x16xf32>
    %274 = vector.shape_cast %273 : vector<1x4x16xf32> to vector<4x16xf32>
    %cst_126 = arith.constant dense<0.000000e+00> : vector<4x32xf32>
    %275 = tpu.matmul %274, %269, %cst_126 {dimension_numbers = #tpu.dot_dimension_numbers<[1], [0], [0], [1], [0, 0, 1, 1], [], []>} : vector<4x16xf32>, vector<16x32xf32>, vector<4x32xf32> -> vector<4x32xf32>
    %c2 = arith.constant 2 : index
    %c0_127 = arith.constant 0 : index
    %c0_128 = arith.constant 0 : index
    %276 = vector.load %arg16[%c2, %c0_127, %c0_128] : memref<4x4x16xf32, #tpu.memory_space<vmem>>, vector<1x4x16xf32>
    %277 = vector.shape_cast %276 : vector<1x4x16xf32> to vector<4x16xf32>
    %cst_129 = arith.constant dense<0.000000e+00> : vector<4x32xf32>
    %278 = tpu.matmul %277, %269, %cst_129 {dimension_numbers = #tpu.dot_dimension_numbers<[1], [0], [0], [1], [0, 0, 1, 1], [], []>} : vector<4x16xf32>, vector<16x32xf32>, vector<4x32xf32> -> vector<4x32xf32>
    %c3 = arith.constant 3 : index
    %c0_130 = arith.constant 0 : index
    %c0_131 = arith.constant 0 : index
    %279 = vector.load %arg16[%c3, %c0_130, %c0_131] : memref<4x4x16xf32, #tpu.memory_space<vmem>>, vector<1x4x16xf32>
    %280 = vector.shape_cast %279 : vector<1x4x16xf32> to vector<4x16xf32>
    %cst_132 = arith.constant dense<0.000000e+00> : vector<4x32xf32>
    %281 = tpu.matmul %280, %269, %cst_132 {dimension_numbers = #tpu.dot_dimension_numbers<[1], [0], [0], [1], [0, 0, 1, 1], [], []>} : vector<4x16xf32>, vector<16x32xf32>, vector<4x32xf32> -> vector<4x32xf32>
    %282 = tpu.concatenate %272, %275, %278, %281 in 1 : vector<4x32xf32>, vector<4x32xf32>, vector<4x32xf32>, vector<4x32xf32> -> vector<4x128xf32>
    %283 = arith.truncf %282 : vector<4x128xf32> to vector<4x128xbf16>
    %c0_133 = arith.constant 0 : index
    %c0_134 = arith.constant 0 : index
    %284 = vector.load %arg18[%c0_133, %c0_134] : memref<128x128xbf16, #tpu.memory_space<vmem>>, vector<128x128xbf16>
    %cst_135 = arith.constant dense<0.000000e+00> : vector<4x128xf32>
    %285 = tpu.matmul %283, %284, %cst_135 {dimension_numbers = #tpu.dot_dimension_numbers<[1], [0], [0], [1], [0, 0, 1, 1], [], []>} : vector<4x128xbf16>, vector<128x128xbf16>, vector<4x128xf32> -> vector<4x128xf32>
    %c0_136 = arith.constant 0 : index
    %c0_137 = arith.constant 0 : index
    %286 = vector.load %arg19[%c0_136, %c0_137] : memref<1x128xf32, #tpu.memory_space<vmem>>, vector<1x128xf32>
    %287 = vector.broadcast %286 : vector<1x128xf32> to vector<4x128xf32>
    %288 = arith.addf %285, %287 : vector<4x128xf32>
    %cst_138 = arith.constant 5.000000e-01 : f32
    %289 = vector.broadcast %cst_138 : f32 to vector<4x128xf32>
    %290 = arith.mulf %289, %288 : vector<4x128xf32>
    %cst_139 = arith.constant 4.471500e-02 : f32
    %291 = vector.broadcast %cst_139 : f32 to vector<4x128xf32>
    %292 = arith.mulf %291, %288 : vector<4x128xf32>
    %293 = arith.mulf %292, %288 : vector<4x128xf32>
    %294 = arith.mulf %293, %288 : vector<4x128xf32>
    %295 = arith.addf %288, %294 : vector<4x128xf32>
    %cst_140 = arith.constant 0.797884583 : f32
    %296 = vector.broadcast %cst_140 : f32 to vector<4x128xf32>
    %297 = arith.mulf %296, %295 : vector<4x128xf32>
    %298 = math.tanh %297 : vector<4x128xf32>
    %cst_141 = arith.constant 1.000000e+00 : f32
    %299 = vector.broadcast %cst_141 : f32 to vector<4x128xf32>
    %300 = arith.addf %299, %298 : vector<4x128xf32>
    %301 = arith.mulf %290, %300 : vector<4x128xf32>
    %302 = arith.truncf %301 : vector<4x128xf32> to vector<4x128xbf16>
    %c0_142 = arith.constant 0 : index
    %c0_143 = arith.constant 0 : index
    %303 = vector.load %arg20[%c0_142, %c0_143] : memref<128x32xbf16, #tpu.memory_space<vmem>>, vector<128x32xbf16>
    %cst_144 = arith.constant dense<0.000000e+00> : vector<4x32xf32>
    %304 = tpu.matmul %302, %303, %cst_144 {dimension_numbers = #tpu.dot_dimension_numbers<[1], [0], [0], [1], [0, 0, 1, 1], [], []>} : vector<4x128xbf16>, vector<128x32xbf16>, vector<4x32xf32> -> vector<4x32xf32>
    %c0_145 = arith.constant 0 : index
    %c0_146 = arith.constant 0 : index
    %305 = vector.load %arg21[%c0_145, %c0_146] : memref<1x32xf32, #tpu.memory_space<vmem>>, vector<1x32xf32>
    %306 = vector.broadcast %305 : vector<1x32xf32> to vector<4x32xf32>
    %307 = arith.addf %304, %306 : vector<4x32xf32>
    %c0_147 = arith.constant 0 : index
    %c0_148 = arith.constant 0 : index
    %308 = vector.load %arg22[%c0_147, %c0_148] : memref<4x32xf32, #tpu.memory_space<vmem>>, vector<4x32xf32>
    tpu.vector_store %arg22[%c0_147, %c0_148], %307 {strides = array<i32>} : memref<4x32xf32, #tpu.memory_space<vmem>>, vector<4x32xf32>,
    return
  }
  func.func @transform_0(%arg0: i32) -> (i32, i32) {
    %c0_i32 = arith.constant 0 : i32
    %c0_i32_0 = arith.constant 0 : i32
    %c0_i32_1 = arith.constant 0 : i32
    return %c0_i32, %c0_i32_0 : i32, i32
  }
  func.func @transform_1(%arg0: i32) -> (i32, i32) {
    %c0_i32 = arith.constant 0 : i32
    %c0_i32_0 = arith.constant 0 : i32
    %c0_i32_1 = arith.constant 0 : i32
    return %c0_i32, %c0_i32_0 : i32, i32
  }
  func.func @transform_2(%arg0: i32) -> (i32, i32) {
    %c0_i32 = arith.constant 0 : i32
    %c0_i32_0 = arith.constant 0 : i32
    %c0_i32_1 = arith.constant 0 : i32
    return %c0_i32, %c0_i32_0 : i32, i32
  }
  func.func @transform_3(%arg0: i32) -> (i32, i32) {
    %c0_i32 = arith.constant 0 : i32
    %c0_i32_0 = arith.constant 0 : i32
    %c0_i32_1 = arith.constant 0 : i32
    return %c0_i32, %c0_i32_0 : i32, i32
  }
  func.func @transform_4(%arg0: i32) -> (i32, i32) {
    %c0_i32 = arith.constant 0 : i32
    %c0_i32_0 = arith.constant 0 : i32
    %c0_i32_1 = arith.constant 0 : i32
    return %c0_i32, %c0_i32_0 : i32, i32
  }
  func.func @transform_5(%arg0: i32) -> (i32, i32, i32) {
    %c0_i32 = arith.constant 0 : i32
    %c0_i32_0 = arith.constant 0 : i32
    %c0_i32_1 = arith.constant 0 : i32
    %c0_i32_2 = arith.constant 0 : i32
    return %c0_i32, %c0_i32_0, %c0_i32_1 : i32, i32, i32
  }
  func.func @transform_6(%arg0: i32) -> (i32, i32, i32) {
    %c0_i32 = arith.constant 0 : i32
    %c0_i32_0 = arith.constant 0 : i32
    %c0_i32_1 = arith.constant 0 : i32
    %c0_i32_2 = arith.constant 0 : i32
    return %c0_i32, %c0_i32_0, %c0_i32_1 : i32, i32, i32
  }
  func.func @transform_7(%arg0: i32) -> (i32, i32, i32) {
    %c0_i32 = arith.constant 0 : i32
    %c0_i32_0 = arith.constant 0 : i32
    %c0_i32_1 = arith.constant 0 : i32
    %c0_i32_2 = arith.constant 0 : i32
    return %c0_i32, %c0_i32_0, %c0_i32_1 : i32, i32, i32
  }
  func.func @transform_8(%arg0: i32) -> (i32, i32, i32) {
    %c0_i32 = arith.constant 0 : i32
    %c0_i32_0 = arith.constant 0 : i32
    %c0_i32_1 = arith.constant 0 : i32
    %c0_i32_2 = arith.constant 0 : i32
    return %c0_i32, %c0_i32_0, %c0_i32_1 : i32, i32, i32
  }
  func.func @transform_9(%arg0: i32) -> (i32, i32, i32) {
    %c0_i32 = arith.constant 0 : i32
    %c0_i32_0 = arith.constant 0 : i32
    %c0_i32_1 = arith.constant 0 : i32
    %c0_i32_2 = arith.constant 0 : i32
    return %c0_i32, %c0_i32_0, %c0_i32_1 : i32, i32, i32
  }
  func.func @transform_10(%arg0: i32) -> (i32, i32, i32) {
    %c0_i32 = arith.constant 0 : i32
    %c0_i32_0 = arith.constant 0 : i32
    %c0_i32_1 = arith.constant 0 : i32
    %c0_i32_2 = arith.constant 0 : i32
    return %c0_i32, %c0_i32_0, %c0_i32_1 : i32, i32, i32
  }
  func.func @transform_11(%arg0: i32) -> (i32, i32, i32) {
    %c0_i32 = arith.constant 0 : i32
    %c0_i32_0 = arith.constant 0 : i32
    %c0_i32_1 = arith.constant 0 : i32
    %c0_i32_2 = arith.constant 0 : i32
    return %c0_i32, %c0_i32_0, %c0_i32_1 : i32, i32, i32
  }
  func.func @transform_12(%arg0: i32) -> (i32, i32, i32) {
    %c0_i32 = arith.constant 0 : i32
    %c0_i32_0 = arith.constant 0 : i32
    %c0_i32_1 = arith.constant 0 : i32
    %c0_i32_2 = arith.constant 0 : i32
    return %c0_i32, %c0_i32_0, %c0_i32_1 : i32, i32, i32
  }
  func.func @transform_13(%arg0: i32) -> (i32, i32, i32) {
    %c0_i32 = arith.constant 0 : i32
    %c0_i32_0 = arith.constant 0 : i32
    %c0_i32_1 = arith.constant 0 : i32
    %c0_i32_2 = arith.constant 0 : i32
    return %c0_i32, %c0_i32_0, %c0_i32_1 : i32, i32, i32
  }
  func.func @transform_14(%arg0: i32) -> (i32, i32, i32) {
    %c0_i32 = arith.constant 0 : i32
    %c0_i32_0 = arith.constant 0 : i32
    %c0_i32_1 = arith.constant 0 : i32
    %c0_i32_2 = arith.constant 0 : i32
    return %c0_i32, %c0_i32_0, %c0_i32_1 : i32, i32, i32
  }
  func.func @transform_15(%arg0: i32) -> (i32, i32, i32) {
    %c0_i32 = arith.constant 0 : i32
    %c0_i32_0 = arith.constant 0 : i32
    %c0_i32_1 = arith.constant 0 : i32
    %c0_i32_2 = arith.constant 0 : i32
    return %c0_i32, %c0_i32_0, %c0_i32_1 : i32, i32, i32
  }
  func.func @transform_16(%arg0: i32) -> (i32, i32) {
    %c0_i32 = arith.constant 0 : i32
    %c0_i32_0 = arith.constant 0 : i32
    %c0_i32_1 = arith.constant 0 : i32
    return %c0_i32, %c0_i32_0 : i32, i32
  }
  func.func @transform_17(%arg0: i32) -> (i32, i32) {
    %c0_i32 = arith.constant 0 : i32
    %c0_i32_0 = arith.constant 0 : i32
    %c0_i32_1 = arith.constant 0 : i32
    return %c0_i32, %c0_i32_0 : i32, i32
  }
  func.func @transform_18(%arg0: i32) -> (i32, i32) {
    %c0_i32 = arith.constant 0 : i32
    %c0_i32_0 = arith.constant 0 : i32
    %c0_i32_1 = arith.constant 0 : i32
    return %c0_i32, %c0_i32_0 : i32, i32
  }
  func.func @transform_19(%arg0: i32) -> (i32, i32) {
    %c0_i32 = arith.constant 0 : i32
    %c0_i32_0 = arith.constant 0 : i32
    %c0_i32_1 = arith.constant 0 : i32
    return %c0_i32, %c0_i32_0 : i32, i32
  }
  func.func @transform_20(%arg0: i32) -> (i32, i32) {
    %c0_i32 = arith.constant 0 : i32
    %c0_i32_0 = arith.constant 0 : i32
    %c0_i32_1 = arith.constant 0 : i32
    return %c0_i32, %c0_i32_0 : i32, i32
  }
  func.func @transform_21(%arg0: i32) -> (i32, i32) {
    %c0_i32 = arith.constant 0 : i32
    %c0_i32_0 = arith.constant 0 : i32
    %c0_i32_1 = arith.constant 0 : i32
    return %c0_i32, %c0_i32_0 : i32, i32
  }
}

</mosaic_0001>

<bundles_post_ra>
// kernel: tpu_custom_call.1
= control target key start
LH: loop header
LB: loop body
LE: loop exit
PB: predicated region body
PF: predicated region fallthrough
CT: control target
= control target key end

     0   :  { %s3938_s0 = inlined_call_operand.hbm [shape: f32[16,96], index: 0, kind: input, shape index: {}]   ;;  %s3939_s1 = inlined_call_operand.vmem [shape: bf16[96,32], index: 1, kind: input, shape index: {}]   ;;  %s3940_s2 = inlined_call_operand.hbm [shape: f32[16,32], index: 2, kind: input, shape index: {}]   ;;  %s3941_s3 = inlined_call_operand.hbm [shape: f32[16,32], index: 3, kind: input, shape index: {}]   ;;  %s3942_s4 = inlined_call_operand.vmem [shape: f32[32,32], index: 4, kind: input, shape index: {}]   ;;  %s3943_s5 = inlined_call_operand.vmem [shape: f32[2,1,32], index: 5, kind: input, shape index: {}]   ;;  %s3944_s6 = inlined_call_operand.vmem [shape: bf16[2,32,128], index: 6, kind: input, shape index: {}]   ;;  %s3945_s7 = inlined_call_operand.hbm [shape: f32[2,1,128], index: 7, kind: input, shape index: {}]   ;;  %s3946_s8 = inlined_call_operand.vmem [shape: bf16[2,32,32], index: 8, kind: input, shape index: {}]   ;;  %s3947_s9 = inlined_call_operand.hbm [shape: f32[2,1,32], index: 9, kind: input, shape index: {}]   ;;  %s3948_s10 = inlined_call_operand.hbm [shape: f32[2,1,32], index: 10, kind: input, shape index: {}]   ;;  %s3949_s11 = inlined_call_operand.vmem [shape: bf16[2,32,128], index: 11, kind: input, shape index: {}]   ;;  %s3950_s12 = inlined_call_operand.vmem [shape: f32[2,1,128], index: 12, kind: input, shape index: {}]   ;;  %s3951_s13 = inlined_call_operand.vmem [shape: bf16[2,64,32], index: 13, kind: input, shape index: {}]   ;;  %s3952_s14 = inlined_call_operand.vmem [shape: f32[2,1,32], index: 14, kind: input, shape index: {}]   ;;  %s3953_s15 = inlined_call_operand.vmem [shape: f32[4,4,16], index: 15, kind: input, shape index: {}]   ;;  %s3954_s16 = inlined_call_operand.vmem [shape: f32[1,32], index: 16, kind: input, shape index: {}]   ;;  %s3955_s17 = inlined_call_operand.vmem [shape: bf16[128,128], index: 17, kind: input, shape index: {}]   ;;  %s3956_s18 = inlined_call_operand.vmem [shape: f32[1,128], index: 18, kind: input, shape index: {}]   ;;  %s3957_s19 = inlined_call_operand.vmem [shape: bf16[128,32], index: 19, kind: input, shape index: {}]   ;;  %s3958_s20 = inlined_call_operand.vmem [shape: f32[1,32], index: 20, kind: input, shape index: {}]   ;;  %s3959_s21 = inlined_call_operand.hbm [shape: f32[4,32], index: 21, kind: output, shape index: {}]  }
   0x1   :  { %3965 = sst [smem:[#allocation19_spill]] %s3938_s0 }
   0x2   :  { %3966 = sst [smem:[#allocation20_spill]] %s3939_s1 }
   0x3   :  { %3967 = sst [smem:[#allocation21_spill]] %s3940_s2 }
   0x4   :  { %3968 = sst [smem:[#allocation22_spill]] %s3941_s3 }
   0x5   :  { %3969 = sst [smem:[#allocation23_spill]] %s3942_s4 }
   0x6   :  { %3970 = sst [smem:[#allocation24_spill]] %s3943_s5 }
   0x7   :  { %26 = vsyncpa [#allocation3], 0 }
   0x8   :  { %27 = vsyncpa [#allocation6], 0 }
   0x9   :  { %28 = vsyncpa [#allocation9], 0 }
   0xa   :  { %29 = vsyncpa [#allocation12], 0 }
   0xb   :  { %30 = vsyncpa [#allocation4], 0  ;;  %s3258_s2 = smov [#allocation5]   ;;  %s3259_s26 = smov [#allocation8]  }
   0xc   :  { %s50_s25 = sshll.u32 %s3258_s2, 4  ;;  %s80_s27 = sshll.u32 %s3259_s26, 4  ;;  %s51_s25 = int_to_ptr.vmem [resolvable:$true] %s50_s25  ;;  %s81_s27 = int_to_ptr.vmem [resolvable:$true] %s80_s27 }
   0xd   :  { %s3116_s3 = scalar_lea.vmem %s51_s25, 256  ;;  %p3121_p1 = scmp.lt.s32.totalorder %s51_s25, %s51_s25 }
   0xe   :  { %p3117_p0 = scmp.ne.s32.totalorder %s51_s25, %s3116_s3  ;;  %p3122_p2 = scmp.lt.s32.totalorder %s3116_s3, %s3116_s3 }
  0x10   :  { %p3123_p3 = por %p3122_p2, %p3121_p1 }
  0x12   :  { %p3124_p4 = pnand %p3123_p3, %p3117_p0 }
  0x14   :  { %3127 = shalt.err (!%p3124_p4)
}
  0x15   :  { %s3260_s28 = smov 128   ;;  %s3261_s29 = smov 8  }
  0x16   :  { %s3971_s30 = sld [smem:[#allocation21_spill]]  ;;  %s3136_s5 = scalar_lea.vmem %s81_s27, 32 }
  0x17   :  { %p3137_p5 = scmp.ne.s32.totalorder %s81_s27, %s3136_s5  ;;  %p3141_p6 = scmp.lt.s32.totalorder %s81_s27, %s81_s27 }
  0x18   :  { %p3142_p7 = scmp.lt.s32.totalorder %s3136_s5, %s3136_s5 }
  0x1a   :  { %p3143_p8 = por %p3142_p7, %p3141_p6 }
  0x1c   :  { %56 = dma.hbm_to_vmem [thread:$0]  %s3971_s30, 256, %s51_s25, [#allocation6], %s3260_s28, %s3260_s28, %s3261_s29  }
  0x1d   :  { %p3144_p9 = pnand %p3143_p8, %p3137_p5 }
  0x1f   :  { %3147 = shalt.err (!%p3144_p9)
}
  0x20   :  { %s3963_s22 = smov 16   ;;  %s3263_s23 = smov 1  }
  0x21   :  { %86 = dma.hbm_to_vmem [thread:$0]  %s3945_s7, 32, %s81_s27, [#allocation9], %s3963_s22, %s3963_s22, %s3263_s23  }
  0x22   :  { %s3264_s2 = smov [#allocation2]   ;;  %s3265_s3 = smov [#allocation7]  }
  0x23   :  { %s36_s26 = sshll.u32 %s3264_s2, 4  ;;  %s62_s25 = sshll.u32 %s3265_s3, 4  ;;  %s37_s26 = int_to_ptr.vmem [resolvable:$true] %s36_s26  ;;  %s63_s25 = int_to_ptr.vmem [resolvable:$true] %s62_s25 }
  0x24   :  { %s3156_s0 = scalar_lea.vmem %s37_s26, 256  ;;  %p3161_p11 = scmp.lt.s32.totalorder %s37_s26, %s37_s26 }
  0x25   :  { %p3157_p10 = scmp.ne.s32.totalorder %s37_s26, %s3156_s0  ;;  %p3162_p12 = scmp.lt.s32.totalorder %s3156_s0, %s3156_s0 }
  0x27   :  { %p3163_p13 = por %p3162_p12, %p3161_p11 }
  0x29   :  { %p3164_p0 = pnand %p3163_p13, %p3157_p10 }
  0x2b   :  { %3167 = shalt.err (!%p3164_p0)
}
  0x2c   :  { %s3972_s5 = sld [smem:[#allocation19_spill]]  ;;  %s3176_s7 = scalar_lea.vmem %s63_s25, 256 }
  0x2d   :  { %p3177_p1 = scmp.ne.s32.totalorder %s63_s25, %s3176_s7  ;;  %p3181_p2 = scmp.lt.s32.totalorder %s63_s25, %s63_s25 }
  0x2e   :  { %p3182_p3 = scmp.lt.s32.totalorder %s3176_s7, %s3176_s7 }
  0x30   :  { %p3183_p4 = por %p3182_p3, %p3181_p2 }
  0x32   :  { %42 = dma.hbm_to_vmem [thread:$0]  %s3972_s5, 256, %s37_s26, [#allocation3], %s3260_s28, %s3260_s28, %s3261_s29  }
  0x33   :  { %p3184_p5 = pnand %p3183_p4, %p3177_p1 }
  0x35   :  { %3187 = shalt.err (!%p3184_p5)
}
  0x36   :  { %s3973_s24 = sld [smem:[#allocation22_spill]]  ;;  %s3266_s2 = smov [#allocation10]  }
  0x37   :  { %s94_s3 = sshll.u32 %s3266_s2, 4  ;;  %s3267_s0 = smov [#allocation11]   ;;  %s95_s3 = int_to_ptr.vmem [resolvable:$true] %s94_s3 }
  0x38   :  { %s106_s22 = sshll.u32 %s3267_s0, 4  ;;  %s3196_s26 = scalar_lea.vmem %s95_s3, 32  ;;  %s107_s22 = int_to_ptr.vmem [resolvable:$true] %s106_s22 }
  0x39   :  { %p3197_p6 = scmp.ne.s32.totalorder %s95_s3, %s3196_s26  ;;  %p3201_p7 = scmp.lt.s32.totalorder %s95_s3, %s95_s3 }
  0x3a   :  { %p3202_p8 = scmp.lt.s32.totalorder %s3196_s26, %s3196_s26 }
  0x3c   :  { %68 = dma.hbm_to_vmem [thread:$0]  %s3973_s24, 256, %s63_s25, [#allocation6], %s3260_s28, %s3260_s28, %s3261_s29  }
  0x3d   :  { %p3203_p9 = por %p3202_p8, %p3201_p7 }
  0x3f   :  { %p3204_p10 = pnand %p3203_p9, %p3197_p6 }
  0x41   :  { %3207 = shalt.err (!%p3204_p10)
}
  0x42   :  { %s3974_s4 = smov 16   ;;  %s3216_s28 = scalar_lea.vmem %s107_s22, 32 }
  0x43   :  { %100 = dma.hbm_to_vmem [thread:$0]  %s3947_s9, 32, %s95_s3, [#allocation9], %s3974_s4, %s3974_s4, %s3263_s23  }
  0x44   :  { %p3217_p11 = scmp.ne.s32.totalorder %s107_s22, %s3216_s28  ;;  %p3221_p12 = scmp.lt.s32.totalorder %s107_s22, %s107_s22 }
  0x45   :  { %p3222_p13 = scmp.lt.s32.totalorder %s3216_s28, %s3216_s28 }
  0x47   :  { %p3223_p0 = por %p3222_p13, %p3221_p12 }
  0x49   :  { %p3224_p1 = pnand %p3223_p0, %p3217_p11 }
  0x4b   :  { %3227 = shalt.err (!%p3224_p1)
}
  0x4c   :  { %112 = dma.hbm_to_vmem [thread:$0]  %s3948_s10, 32, %s107_s22, [#allocation12], %s3974_s4, %s3974_s4, %s3263_s23  }
  0x4d   :  { %3248 = dma.done.wait [#allocation3], 256  }
  0x4e   :  { %3249 = vsyncadd [#allocation3], 4294967040 }
  0x4f   :  { %3250 = dma.done.wait [#allocation6], 512  }
  0x50   :  { %3251 = vsyncadd [#allocation6], 4294966784 }
  0x51   :  { %3252 = dma.done.wait [#allocation9], 64  }
  0x52   :  { %3253 = vsyncadd [#allocation9], 4294967232 }
  0x53   :  { %3254 = dma.done.wait [#allocation12], 32  }
  0x54   :  { %3255 = vsyncadd [#allocation12], 4294967264  ;;  %v3268_v0 = vmov 0.0   ;;  %vm3269_vm0 = vmmov 0   ;;  %s3975_s22 = sld [smem:[#allocation20_spill]]  ;;  %vm203_vm1 = vcmask 785408  }
  0x55   :  { %2719 = vmatprep.subr.bf16.mxu0 %v3268_v0  ;;  %2731 = vmatprep.mubr.msk.bf16.mxu0 %vm3269_vm0, %v3268_v0  ;;  %v152_v7 = vld [vmem:[#allocation2] sm:$0xff]  ;;  %v153_v8 = vld [vmem:[#allocation2 + $0x8] sm:$0xff]  ;;  %vm259_vm2 = vcmask 261120   ;;  %v3473_v20 = vld [vmem:[#allocation5] sm:$0xff]  ;;  %s3270_s23 = smov 32   ;;  %s3977_s1 = sld [smem:[#allocation24_spill]] }
  0x56   :  { %2735 = vmatprep.subr.bf16.mxu1 %v3268_v0  ;;  %2739 = vmatprep.mubr.msk.bf16.mxu1 %vm3269_vm0, %v3268_v0  ;;  %v154_v9 = vpack.c.bf16 %v153_v8, %v152_v7  ;;  %v3002_v18 = vld [vmem:[%s3944_s6 + $0x8] sm:$0xff]   ;;  %v3003_v19 = vld [vmem:[%s3944_s6] sm:$0xff]   ;;  %v2506_v39 = vld [vmem:[#allocation8] ss:$0 sm:$0xff]  ;;  %s3271_s5 = smov 96   ;;  %vm548_vm3 = vcmask 130048  }
  0x57   :  { %2736 = vmatpush3.bf16.msra.mxu1 %v3002_v18  ;;  %v3526_v46 = vld [vmem:[#allocation5 + $0x8] sm:$0xff]  ;;  %v3540_v49 = vld [vmem:[#allocation7 + $0x8] sm:$0xff]  ;;  %v3542_v51 = vld [vmem:[#allocation7] sm:$0xff]  ;;  %s3272_s28 = smov 64   ;;  %s3273_s29 = smov 112   ;;  %vm1026_vm4 = vcmask 523264  }
  0x58   :  { %2737 = vmatprep.subr.bf16.mxu1 %v3268_v0  ;;  %s3274_s25 = smov 80   ;;  %s3275_s9 = smov 48   ;;  %vm2478_vm5 = vcmask 257024  }
  0x5a   :  { %v2996_v1 = vld [vmem:[%s3975_s22 + $0x28] sm:$0xff]   ;;  %v2997_v2 = vld [vmem:[%s3975_s22 + $0x20] sm:$0xff]   ;;  %v2998_v3 = vld [vmem:[%s3975_s22 + $0x18] sm:$0xff]  }
  0x5b   :  { %2720 = vmatpush3.bf16.msra.mxu0 %v2996_v1  ;;  %v2999_v4 = vld [vmem:[%s3975_s22 + $0x10] sm:$0xff]   ;;  %v3000_v5 = vld [vmem:[%s3975_s22 + $0x8] sm:$0xff]   ;;  %v3001_v6 = vld [vmem:[%s3975_s22] sm:$0xff]   ;;  %2738 = vmatpush3.bf16.msra.mxu1 %v3003_v19  ;;  %s3976_s22 = sld [smem:[#allocation23_spill]] }
  0x5c   :  { %2721 = vmatprep.subr.bf16.mxu0 %v3268_v0  ;;  %v2505_v31 = vld [vmem:[%s3977_s1] ss:$0 sm:$0xff] }
  0x5f   :  { %2722 = vmatpush3.bf16.msra.mxu0 %v2997_v2 }
  0x60   :  { %2723 = vmatprep.subr.bf16.mxu0 %v3268_v0 }
  0x61   :  { %v3478_v21 = vld [vmem:[%s3976_s22 + $0x18] sm:$0xff]  ;;  %v3493_v36 = vld [vmem:[%s3976_s22 + $0x10] sm:$0xff]  ;;  %v3500_v37 = vld [vmem:[%s3976_s22 + $0x8] sm:$0xff] }
  0x62   :  { %2743 = vmatprep.subr.mxu1 %v3478_v21  ;;  %v3507_v38 = vld [vmem:[%s3976_s22] sm:$0xff] }
  0x63   :  { %2724 = vmatpush3.bf16.msra.mxu0 %v2998_v3 }
  0x64   :  { %2725 = vmatprep.subr.bf16.mxu0 %v3268_v0 }
  0x67   :  { %2726 = vmatpush3.bf16.msra.mxu0 %v2999_v4 }
  0x68   :  { %2727 = vmatprep.subr.bf16.mxu0 %v3268_v0 }
  0x6b   :  { %2728 = vmatpush3.bf16.msra.mxu0 %v3000_v5 }
  0x6c   :  { %2729 = vmatprep.subr.bf16.mxu0 %v3268_v0 }
  0x6f   :  { %2730 = vmatpush3.bf16.msra.mxu0 %v3001_v6 }
  0x70   :  { %2765 = vmatprep.subr.bf16.mxu0 %v3268_v0 }
  0x72   :  { %2732 = vmatmul.mubr.msk.bf16.vlgmr.msra.gmra.mxu0 %vm203_vm1, %v154_v9 }
  0x73   :  { %2767 = vmatprep.mubr.msk.bf16.mxu0 %vm3269_vm0, %v3268_v0 }
 0x132   :  { %v3456_v10 = vpop.f32.mrf.mxu0 }
 0x133   :  { %v257_v11 = vmul.f32 %v3456_v10, %v3456_v10 }
 0x134   :  { %v2733_v12 = vpop.f32.mrf.mxu0 }
 0x135   :  { %v260_v13 = vsel %vm259_vm2, %v257_v11, 0.0 }
 0x136   :  { %261 = vadd.xlane.f32.xlu0 %v260_v13  ;;  %v3461_v14 = vpop.f32.mrf.mxu0 }
 0x137   :  { %v258_v15 = vmul.f32 %v3461_v14, %v3461_v14 }
 0x138   :  { %v2734_v16 = vpop.f32.mrf.mxu0 }
 0x139   :  { %v263_v17 = vsel %vm259_vm2, %v258_v15, 0.0 }
 0x13a   :  { %264 = vadd.xlane.f32.xlu0 %v263_v17 }
 0x150   :  { %440 = vrot.lane.b32.xlu0 %v3473_v20, %s3270_s23 }
 0x1bf   :  { %v262_v22 = vpop.xlane.xlu0 %261 }
 0x1c0   :  { %v267_v23 = vmul.f32 0.03125, %v262_v22 }
 0x1c2   :  { %v269_v24 = vadd.f32 1e-06, %v267_v23 }
 0x1c3   :  { %v265_v25 = vpop.xlane.xlu0 %264 }
 0x1c4   :  { %3038 = vrsqrt.f32 %v269_v24  ;;  %v268_v26 = vmul.f32 0.03125, %v265_v25 }
 0x1c6   :  { %v270_v27 = vadd.f32 1e-06, %v268_v26 }
 0x1c7   :  { %v3556_v2 = vpop.permute.xlu0 %440 }
 0x1c8   :  { %3040 = vrsqrt.f32 %v270_v27 }
 0x1d1   :  { %v3039_v28 = vpop.eup %3038 }
 0x1d2   :  { %v273_v29 = vmul.f32 %v3039_v28, %v3456_v10 }
 0x1d4   :  { %v281_v33 = vmul.f32 %v2505_v31, %v273_v29 }
 0x1d5   :  { %v3041_v30 = vpop.eup %3040 }
 0x1d6   :  { %v274_v32 = vmul.f32 %v3041_v30, %v3461_v14 }
 0x1d8   :  { %v282_v34 = vmul.f32 %v2505_v31, %v274_v32 }
 0x1da   :  { %v283_v35 = vpack.c.bf16 %v282_v34, %v281_v33 }
 0x1dc   :  { %2740 = vmatmul.mubr.msk.bf16.vlgmr.msra.gmra.mxu1 %vm259_vm2, %v283_v35 }
 0x1dd   :  { %2744 = vmatpush3.msra.mxu1 %v3478_v21 }
 0x1de   :  { %2745 = vmatprep.subr.mxu1 %v3493_v36 }
 0x1df   :  { %2746 = vmatpush3.msra.mxu1 %v3493_v36 }
 0x1e0   :  { %2747 = vmatprep.subr.mxu1 %v3500_v37 }
 0x1e1   :  { %2748 = vmatpush3.msra.mxu1 %v3500_v37 }
 0x1e2   :  { %2749 = vmatprep.subr.mxu1 %v3507_v38 }
 0x1e3   :  { %2750 = vmatpush3.msra.mxu1 %v3507_v38 }
 0x1e4   :  { %2754 = vmatprep.subr.mxu1 %v3478_v21 }
 0x29c   :  { %v344_v40 = vpop.f32.mrf.mxu1 }
 0x29d   :  { %v3512_v41 = vadd.f32 %v2506_v39, %v344_v40 }
 0x29e   :  { %v2741_v42 = vpop.f32.mrf.mxu1 }
 0x29f   :  { %448 = vrot.lane.b32.xlu1 %v3512_v41, %s3271_s5  ;;  %2751 = vmatprep.mubr.msk.f32.mxu1 %vm259_vm2, %v3512_v41  ;;  %v351_v55 = vmul.f32 %v3512_v41, %v3473_v20  ;;  %v446_v4 = vmul.f32 %v3556_v2, %v3512_v41 }
 0x2a0   :  { %v347_v43 = vpop.f32.mrf.mxu1 }
 0x2a1   :  { %v3518_v44 = vadd.f32 %v2506_v39, %v347_v43 }
 0x2a2   :  { %v2742_v45 = vpop.f32.mrf.mxu1 }
 0x2a3   :  { %450 = vrot.lane.b32.xlu1 %v3518_v44, %s3271_s5  ;;  %2752 = vmatmul.mubr.msk.f32.vlgmr.msra.gmra.mxu1 %vm259_vm2, %v3518_v44  ;;  %v352_v54 = vmul.f32 %v3518_v44, %v3526_v46  ;;  %v621_v34 = vpack.c.bf16 %v3518_v44, %v3512_v41 }
 0x2a4   :  { %2755 = vmatpush3.msra.mxu1 %v3478_v21 }
 0x2a5   :  { %2756 = vmatprep.subr.mxu1 %v3493_v36 }
 0x2a6   :  { %2757 = vmatpush3.msra.mxu1 %v3493_v36 }
 0x2a7   :  { %442 = vrot.lane.b32.xlu1 %v3526_v46, %s3270_s23  ;;  %2758 = vmatprep.subr.mxu1 %v3500_v37 }
 0x2a8   :  { %2759 = vmatpush3.msra.mxu1 %v3500_v37 }
 0x2a9   :  { %2760 = vmatprep.subr.mxu1 %v3507_v38 }
 0x2aa   :  { %2761 = vmatpush3.msra.mxu1 %v3507_v38 }
 0x2ab   :  { %2771 = vmatprep.subr.bf16.mxu1 %v3268_v0 }
 0x311   :  { %v449_v47 = vpop.permute.xlu1 %448 }
 0x312   :  { %2762 = vmatprep.mubr.msk.f32.mxu1 %vm259_vm2, %v449_v47 }
 0x315   :  { %v451_v48 = vpop.permute.xlu1 %450 }
 0x316   :  { %2763 = vmatmul.mubr.msk.f32.vlgmr.msra.gmra.mxu1 %vm259_vm2, %v451_v48 }
 0x317   :  { %2773 = vmatprep.mubr.msk.bf16.mxu1 %vm3269_vm0, %v3268_v0 }
 0x319   :  { %v3554_v1 = vpop.permute.xlu1 %442 }
 0x31a   :  { %v447_v5 = vmul.f32 %v3554_v1, %v3518_v44 }
 0x363   :  { %v2753_v50 = vpop.f32.mrf.mxu1 }
 0x364   :  { %v435_v52 = vmul.f32 %v2753_v50, %v3540_v49 }
 0x365   :  { %v425_v53 = vpop.f32.mrf.mxu1 }
 0x366   :  { %v434_v56 = vmul.f32 %v425_v53, %v3542_v51  ;;  %v437_v57 = vadd.f32 %v435_v52, %v352_v54 }
 0x368   :  { %v436_v58 = vadd.f32 %v434_v56, %v351_v55 }
 0x36a   :  { %v543_v59 = vpack.c.bf16 %v437_v57, %v436_v58 }
 0x3d6   :  { %v2764_v60 = vpop.f32.mrf.mxu1 }
 0x3d7   :  { %v532_v63 = vmul.f32 %v2764_v60, %v3540_v49 }
 0x3d8   :  { %v522_v61 = vpop.f32.mrf.mxu1 }
 0x3d9   :  { %v531_v62 = vmul.f32 %v522_v61, %v3542_v51 }
 0x3db   :  { %535 = vrot.lane.b32.xlu1 %v531_v62, %s3270_s23 }
 0x3df   :  { %537 = vrot.lane.b32.xlu1 %v532_v63, %s3270_s23 }
 0x44d   :  { %v536_v3 = vpop.permute.xlu1 %535 }
 0x44e   :  { %v541_v7 = vadd.f32 %v536_v3, %v446_v4 }
 0x451   :  { %v538_v6 = vpop.permute.xlu1 %537 }
 0x452   :  { %v542_v8 = vadd.f32 %v538_v6, %v447_v5 }
 0x454   :  { %v544_v9 = vpack.c.bf16 %v542_v8, %v541_v7 }
 0x456   :  { %546 = vrot.lane.b32.xlu1 %v544_v9, %s3271_s5 }
 0x4c8   :  { %v547_v11 = vpop.permute.xlu1 %546 }
 0x4c9   :  { %v553_v12 = vsel %vm548_vm3, %v547_v11, 0 }
 0x4ca   :  { %2766 = vmatpush3.bf16.xpose.msra.mxu0 %v553_v12 }
 0x4cb   :  { %2783 = vmatprep.subr.bf16.mxu0 %v3268_v0 }
 0x4d1   :  { %2768 = vmatmul.mubr.msk.bf16.vlgmr.msra.gmra.mxu0 %vm548_vm3, %v543_v59 }
 0x4d2   :  { %2785 = vmatprep.mubr.msk.bf16.mxu0 %vm3269_vm0, %v3268_v0 }
 0x591   :  { %v589_v13 = vpop.f32.mrf.mxu0 }
 0x592   :  { %v596_v15 = vmul.f32 0.25, %v589_v13 }
 0x593   :  { %v2769_v16 = vpop.f32.mrf.mxu0 }
 0x594   :  { %v598_v17 = vsel %vm548_vm3, %v596_v15, -inf }
 0x595   :  { %599 = vmax.xlane.f32.xlu1 %v598_v17  ;;  %v592_v18 = vpop.f32.mrf.mxu0 }
 0x596   :  { %v597_v19 = vmul.f32 0.25, %v592_v18 }
 0x597   :  { %v2770_v22 = vpop.f32.mrf.mxu0 }
 0x598   :  { %v601_v23 = vsel %vm548_vm3, %v597_v19, -inf }
 0x599   :  { %602 = vmax.xlane.f32.xlu0 %v601_v23 }
 0x61e   :  { %v600_v24 = vpop.xlane.xlu1 %599 }
 0x61f   :  { %v604_v25 = vsub.f32 %v596_v15, %v600_v24 }
 0x621   :  { %v606_v26 = vmul.f32 1.442695, %v604_v25  ;;  %v3004_v25 = vld [vmem:[%s3946_s8 + $0x8] sm:$0xff]  }
 0x622   :  { %v603_v27 = vpop.xlane.xlu0 %602 }
 0x623   :  { %3042 = vpow2.f32 %v606_v26  ;;  %v605_v28 = vsub.f32 %v597_v19, %v603_v27  ;;  %v3005_v26 = vld [vmem:[%s3946_s8] sm:$0xff]  }
 0x625   :  { %v608_v29 = vmul.f32 1.442695, %v605_v28 }
 0x627   :  { %3044 = vpow2.f32 %v608_v29 }
 0x630   :  { %v3043_v30 = vpop.eup %3042 }
 0x631   :  { %v610_v31 = vsel %vm548_vm3, %v3043_v30, 0.0 }
 0x632   :  { %611 = vadd.xlane.f32.xlu1 %v610_v31 }
 0x634   :  { %v3045_v32 = vpop.eup %3044 }
 0x635   :  { %v613_v33 = vsel %vm548_vm3, %v3045_v32, 0.0 }
 0x636   :  { %614 = vadd.xlane.f32.xlu0 %v613_v33 }
 0x643   :  { %623 = vrot.lane.b32.xlu1 %v621_v34, %s3272_s28 }
 0x647   :  { %671 = vrot.lane.b32.xlu1 %v543_v59, %s3273_s29 }
 0x64c   :  { %673 = vrot.lane.b32.xlu0 %v544_v9, %s3274_s25 }
 0x6bb   :  { %v612_v35 = vpop.xlane.xlu1 %611 }
 0x6bc   :  { %3046 = vrcp.f32 %v612_v35 }
 0x6bf   :  { %v624_v39 = vpop.permute.xlu1 %623  ;;  %v615_v40 = vpop.xlane.xlu0 %614 }
 0x6c0   :  { %3048 = vrcp.f32 %v615_v40  ;;  %2772 = vmatpush3.bf16.msra.mxu1 %v624_v39 }
 0x6c1   :  { %2777 = vmatprep.subr.bf16.mxu1 %v3268_v0 }
 0x6c3   :  { %v674_v45 = vpop.permute.xlu0 %673  ;;  %v672_v50 = vpop.permute.xlu1 %671 }
 0x6c4   :  { %v679_v48 = vsel %vm548_vm3, %v674_v45, 0 }
 0x6c9   :  { %v3047_v42 = vpop.eup %3046 }
 0x6ca   :  { %v618_v41 = vmul.f32 %v3047_v42, %v3043_v30 }
 0x6cd   :  { %v3049_v43 = vpop.eup %3048 }
 0x6ce   :  { %v619_v44 = vmul.f32 %v3049_v43, %v3045_v32  ;;  %v2521_v43 = vld [vmem:[#allocation10] ss:$0 sm:$0xff] }
 0x6d0   :  { %v620_v47 = vpack.c.bf16 %v619_v44, %v618_v41 }
 0x6d2   :  { %2774 = vmatmul.mubr.msk.bf16.vlgmr.msra.gmra.mxu1 %vm548_vm3, %v620_v47 }
 0x6d3   :  { %2778 = vmatpush3.bf16.xpose.msra.mxu1 %v679_v48  ;;  %2779 = vmatprep.mubr.msk.bf16.mxu1 %vm3269_vm0, %v3268_v0 }
 0x6d4   :  { %2789 = vmatprep.subr.bf16.mxu1 %v3268_v0 }
 0x6da   :  { %2780 = vmatmul.mubr.msk.bf16.vlgmr.msra.gmra.mxu1 %vm548_vm3, %v672_v50 }
 0x6db   :  { %2793 = vmatprep.mubr.msk.bf16.mxu1 %vm3269_vm0, %v3268_v0  ;;  %2790 = vmatpush3.bf16.msra.mxu1 %v3004_v25 }
 0x6dc   :  { %2791 = vmatprep.subr.bf16.mxu1 %v3268_v0 }
 0x6df   :  { %2792 = vmatpush3.bf16.msra.mxu1 %v3005_v26 }
 0x6e0   :  { %2805 = vmatprep.subr.bf16.mxu1 %v3268_v0 }
 0x792   :  { %v663_v52 = vpop.f32.mrf.mxu1 }
 0x794   :  { %v2775_v53 = vpop.f32.mrf.mxu1 }
 0x796   :  { %v666_v54 = vpop.f32.mrf.mxu1 }
 0x798   :  { %v2776_v55 = vpop.f32.mrf.mxu1 }
 0x79a   :  { %v715_v56 = vpop.f32.mrf.mxu1 }
 0x79b   :  { %v722_v57 = vmul.f32 0.25, %v715_v56  ;;  %v3006_v56 = vld [vmem:[%s3949_s11 + $0x8] sm:$0xff]  }
 0x79c   :  { %v2781_v58 = vpop.f32.mrf.mxu1 }
 0x79d   :  { %v724_v59 = vsel %vm548_vm3, %v722_v57, -inf }
 0x79e   :  { %725 = vmax.xlane.f32.xlu1 %v724_v59  ;;  %v718_v60 = vpop.f32.mrf.mxu1 }
 0x79f   :  { %v723_v61 = vmul.f32 0.25, %v718_v60 }
 0x7a0   :  { %v2782_v62 = vpop.f32.mrf.mxu1 }
 0x7a1   :  { %v727_v63 = vsel %vm548_vm3, %v723_v61, -inf }
 0x7a2   :  { %728 = vmax.xlane.f32.xlu0 %v727_v63 }
 0x827   :  { %v726_v3 = vpop.xlane.xlu1 %725 }
 0x828   :  { %v730_v4 = vsub.f32 %v722_v57, %v726_v3 }
 0x82a   :  { %v732_v5 = vmul.f32 1.442695, %v730_v4 }
 0x82b   :  { %v729_v6 = vpop.xlane.xlu0 %728 }
 0x82c   :  { %3050 = vpow2.f32 %v732_v5  ;;  %v731_v7 = vsub.f32 %v723_v61, %v729_v6  ;;  %v2522_v5 = vld [vmem:[#allocation11] ss:$0 sm:$0xff] }
 0x82e   :  { %v734_v8 = vmul.f32 1.442695, %v731_v7 }
 0x830   :  { %3052 = vpow2.f32 %v734_v8 }
 0x839   :  { %v3051_v9 = vpop.eup %3050 }
 0x83a   :  { %v736_v11 = vsel %vm548_vm3, %v3051_v9, 0.0 }
 0x83b   :  { %737 = vadd.xlane.f32.xlu0 %v736_v11  ;;  %v3008_v11 = vld [vmem:[%s3951_s13 + $0x18] sm:$0xff]  }
 0x83d   :  { %v3053_v12 = vpop.eup %3052 }
 0x83e   :  { %v739_v13 = vsel %vm548_vm3, %v3053_v12, 0.0 }
 0x83f   :  { %740 = vadd.xlane.f32.xlu1 %v739_v13  ;;  %v3010_v13 = vld [vmem:[%s3951_s13 + $0x8] sm:$0xff]  }
 0x851   :  { %747 = vrot.lane.b32.xlu0 %v621_v34, %s3275_s9 }
 0x8c4   :  { %v738_v15 = vpop.xlane.xlu0 %737 }
 0x8c5   :  { %3054 = vrcp.f32 %v738_v15  ;;  %v3011_v15 = vld [vmem:[%s3951_s13] sm:$0xff]  }
 0x8c8   :  { %v741_v16 = vpop.xlane.xlu1 %740  ;;  %v748_v17 = vpop.permute.xlu0 %747 }
 0x8c9   :  { %3056 = vrcp.f32 %v741_v16  ;;  %2784 = vmatpush3.bf16.msra.mxu0 %v748_v17  ;;  %v2523_v16 = vld [vmem:[%s3950_s12] ss:$0 sm:$0xff] }
 0x8ca   :  { %2797 = vmatprep.subr.bf16.mxu0 %v3268_v0 }
 0x8d2   :  { %v3055_v18 = vpop.eup %3054 }
 0x8d3   :  { %v744_v22 = vmul.f32 %v3055_v18, %v3051_v9 }
 0x8d6   :  { %v3057_v19 = vpop.eup %3056 }
 0x8d7   :  { %v745_v23 = vmul.f32 %v3057_v19, %v3053_v12  ;;  %v3009_v12 = vld [vmem:[%s3951_s13 + $0x10] sm:$0xff]  }
 0x8d9   :  { %v746_v24 = vpack.c.bf16 %v745_v23, %v744_v22 }
 0x8db   :  { %2786 = vmatmul.mubr.msk.bf16.vlgmr.msra.gmra.mxu0 %vm548_vm3, %v746_v24 }
 0x8dc   :  { %2801 = vmatprep.mubr.msk.bf16.mxu0 %vm3269_vm0, %v3268_v0  ;;  %2798 = vmatpush3.bf16.msra.mxu0 %v3006_v56 }
 0x8dd   :  { %2799 = vmatprep.subr.bf16.mxu0 %v3268_v0 }
 0x99b   :  { %v787_v27 = vpop.f32.mrf.mxu0 }
 0x99d   :  { %v2787_v28 = vpop.f32.mrf.mxu0 }
 0x99f   :  { %v790_v29 = vpop.f32.mrf.mxu0 }
 0x9a0   :  { %v2986_v30 = vpack.i.bf16 %v790_v29, %v787_v27 }
 0x9a1   :  { %v2788_v31 = vpop.f32.mrf.mxu0 }
 0x9a2   :  { %2987 = vrot.lane.b32.xlu1 %v2986_v30, %s3974_s4 }
 0xa14   :  { %v2988_v32 = vpop.permute.xlu1 %2987 }
 0xa15   :  { %v2990_v33 = vunpack.i.h.bf16 %v2988_v32  ;;  %v2989_v34 = vunpack.i.l.bf16 %v2988_v32 }
 0xa17   :  { %v803_v35 = vsel %vm548_vm3, %v666_v54, %v2990_v33  ;;  %v802_v39 = vsel %vm548_vm3, %v663_v52, %v2989_v34 }
 0xa18   :  { %v804_v40 = vpack.c.bf16 %v803_v35, %v802_v39 }
 0xa1a   :  { %2794 = vmatmul.mubr.msk.bf16.vlgmr.msra.gmra.mxu1 %vm259_vm2, %v804_v40 }
 0xa1b   :  { %2813 = vmatprep.mubr.msk.bf16.mxu1 %vm3269_vm0, %v3268_v0  ;;  %2806 = vmatpush3.bf16.msra.mxu1 %v3008_v11 }
 0xa1c   :  { %2807 = vmatprep.subr.bf16.mxu1 %v3268_v0 }
 0xa1f   :  { %2808 = vmatpush3.bf16.msra.mxu1 %v3009_v12 }
 0xa20   :  { %2809 = vmatprep.subr.bf16.mxu1 %v3268_v0 }
 0xa23   :  { %2810 = vmatpush3.bf16.msra.mxu1 %v3010_v13  ;;  %v2541_v13 = vld [vmem:[#allocation8 + $0x1] ss:$0 sm:$0xff] }
 0xa24   :  { %2811 = vmatprep.subr.bf16.mxu1 %v3268_v0 }
 0xa27   :  { %2812 = vmatpush3.bf16.msra.mxu1 %v3011_v15 }
 0xa28   :  { %2836 = vmatprep.subr.mxu1 %v3478_v21 }
 0xada   :  { %v858_v42 = vpop.f32.mrf.mxu1 }
 0xadb   :  { %v865_v41 = vadd.f32 %v858_v42, %v3456_v10 }
 0xadc   :  { %v2795_v44 = vpop.f32.mrf.mxu1 }
 0xadd   :  { %v3610_v45 = vadd.f32 %v2521_v43, %v865_v41  ;;  %v2534_v44 = vld [vmem:[%s3952_s14] ss:$0 sm:$0xff] }
 0xade   :  { %v861_v47 = vpop.f32.mrf.mxu1 }
 0xadf   :  { %v866_v48 = vadd.f32 %v861_v47, %v3461_v14  ;;  %v877_v50 = vmul.f32 %v3610_v45, %v3610_v45  ;;  %v3007_v14 = vld [vmem:[%s3949_s11] sm:$0xff]  }
 0xae0   :  { %v2796_v52 = vpop.f32.mrf.mxu1  ;;  %2800 = vmatpush3.bf16.msra.mxu0 %v3007_v14 }
 0xae1   :  { %v3615_v53 = vadd.f32 %v2521_v43, %v866_v48  ;;  %v879_v54 = vsel %vm259_vm2, %v877_v50, 0.0  ;;  %2817 = vmatprep.subr.bf16.mxu0 %v3268_v0 }
 0xae2   :  { %880 = vadd.xlane.f32.xlu1 %v879_v54 }
 0xae3   :  { %v878_v55 = vmul.f32 %v3615_v53, %v3615_v53 }
 0xae5   :  { %v882_v10 = vsel %vm259_vm2, %v878_v55, 0.0 }
 0xae6   :  { %883 = vadd.xlane.f32.xlu0 %v882_v10 }
 0xb6b   :  { %v881_v57 = vpop.xlane.xlu1 %880 }
 0xb6c   :  { %v885_v58 = vmul.f32 0.03125, %v881_v57 }
 0xb6e   :  { %v887_v59 = vadd.f32 1e-06, %v885_v58  ;;  %v3012_v58 = vld [vmem:[%s3944_s6 + $0x18] sm:$0xff]  }
 0xb6f   :  { %v884_v60 = vpop.xlane.xlu0 %883 }
 0xb70   :  { %3058 = vrsqrt.f32 %v887_v59  ;;  %v886_v61 = vmul.f32 0.03125, %v884_v60 }
 0xb72   :  { %v888_v62 = vadd.f32 1e-06, %v886_v61 }
 0xb74   :  { %3060 = vrsqrt.f32 %v888_v62 }
 0xb7d   :  { %v3059_v63 = vpop.eup %3058 }
 0xb7e   :  { %v891_v3 = vmul.f32 %v3059_v63, %v3610_v45 }
 0xb80   :  { %v899_v7 = vmul.f32 %v2522_v5, %v891_v3 }
 0xb81   :  { %v3061_v4 = vpop.eup %3060 }
 0xb82   :  { %v892_v6 = vmul.f32 %v3061_v4, %v3615_v53 }
 0xb84   :  { %v900_v8 = vmul.f32 %v2522_v5, %v892_v6 }
 0xb86   :  { %v901_v9 = vpack.c.bf16 %v900_v8, %v899_v7  ;;  %v2536_v7 = vld [vmem:[%s3977_s1 + $0x1] ss:$0 sm:$0xff] }
 0xb88   :  { %2802 = vmatmul.mubr.msk.bf16.vlgmr.msra.gmra.mxu0 %vm259_vm2, %v901_v9 }
 0xb89   :  { %2821 = vmatprep.mubr.msk.bf16.mxu0 %vm3269_vm0, %v3268_v0  ;;  %2818 = vmatpush3.bf16.msra.mxu0 %v3012_v58 }
 0xb8a   :  { %2819 = vmatprep.subr.bf16.mxu0 %v3268_v0 }
 0xc48   :  { %v962_v17 = vpop.f32.mrf.mxu0 }
 0xc49   :  { %v963_v18 = vadd.f32 %v2523_v16, %v962_v17 }
 0xc4a   :  { %v2803_v19 = vpop.f32.mrf.mxu0 }
 0xc4b   :  { %985 = vrot.lane.b32.xlu0 %v963_v18, %s3272_s28  ;;  %v2527_v25 = vmul.f32 -1.442695, %v963_v18 }
 0xc4c   :  { %v965_v22 = vpop.f32.mrf.mxu0 }
 0xc4d   :  { %v966_v23 = vadd.f32 %v2523_v16, %v965_v22  ;;  %3062 = vpow2.f32 %v2527_v25 }
 0xc4e   :  { %v2804_v24 = vpop.f32.mrf.mxu0 }
 0xc4f   :  { %987 = vrot.lane.b32.xlu1 %v966_v23, %s3272_s28  ;;  %v2528_v26 = vmul.f32 -1.442695, %v966_v23 }
 0xc51   :  { %3064 = vpow2.f32 %v2528_v26 }
 0xc5a   :  { %v3063_v27 = vpop.eup %3062 }
 0xc5b   :  { %v975_v29 = vadd.f32 1.0, %v3063_v27 }
 0xc5d   :  { %3066 = vrcp.f32 %v975_v29 }
 0xc5e   :  { %v3065_v28 = vpop.eup %3064 }
 0xc5f   :  { %v976_v30 = vadd.f32 1.0, %v3065_v28 }
 0xc61   :  { %3068 = vrcp.f32 %v976_v30 }
 0xc6a   :  { %v3067_v31 = vpop.eup %3066 }
 0xc6b   :  { %v981_v34 = vmul.f32 %v3067_v31, %v963_v18 }
 0xc6e   :  { %v3069_v32 = vpop.eup %3068 }
 0xc6f   :  { %v982_v35 = vmul.f32 %v3069_v32, %v966_v23 }
 0xcbd   :  { %v986_v33 = vpop.permute.xlu0 %985 }
 0xcbe   :  { %v991_v40 = vmul.f32 %v986_v33, %v981_v34 }
 0xcc1   :  { %v988_v39 = vpop.permute.xlu1 %987 }
 0xcc2   :  { %v992_v42 = vmul.f32 %v988_v39, %v982_v35 }
 0xcc4   :  { %v993_v43 = vpack.c.bf16 %v992_v42, %v991_v40 }
 0xcc6   :  { %2814 = vmatmul.mubr.msk.bf16.vlgmr.msra.gmra.mxu1 %vm1026_vm4, %v993_v43 }
 0xcc7   :  { %2837 = vmatpush3.msra.mxu1 %v3478_v21 }
 0xcc8   :  { %2838 = vmatprep.subr.mxu1 %v3493_v36 }
 0xcc9   :  { %2839 = vmatpush3.msra.mxu1 %v3493_v36 }
 0xcca   :  { %2840 = vmatprep.subr.mxu1 %v3500_v37 }
 0xccb   :  { %2841 = vmatpush3.msra.mxu1 %v3500_v37 }
 0xccc   :  { %2842 = vmatprep.subr.mxu1 %v3507_v38 }
 0xccd   :  { %2843 = vmatpush3.msra.mxu1 %v3507_v38 }
 0xcce   :  { %2853 = vmatprep.subr.bf16.mxu1 %v3268_v0 }
 0xd86   :  { %v1064_v41 = vpop.f32.mrf.mxu1 }
 0xd87   :  { %v1071_v47 = vadd.f32 %v1064_v41, %v3610_v45 }
 0xd88   :  { %v2815_v48 = vpop.f32.mrf.mxu1 }
 0xd89   :  { %v3668_v50 = vadd.f32 %v2534_v44, %v1071_v47 }
 0xd8a   :  { %v1067_v52 = vpop.f32.mrf.mxu1 }
 0xd8b   :  { %v1072_v54 = vadd.f32 %v1067_v52, %v3615_v53  ;;  %v1084_v55 = vmul.f32 %v3668_v50, %v3668_v50  ;;  %v3013_v53 = vld [vmem:[%s3944_s6 + $0x10] sm:$0xff]  }
 0xd8c   :  { %v2816_v10 = vpop.f32.mrf.mxu1  ;;  %2820 = vmatpush3.bf16.msra.mxu0 %v3013_v53 }
 0xd8d   :  { %v3673_v56 = vadd.f32 %v2534_v44, %v1072_v54  ;;  %v1086_v14 = vsel %vm259_vm2, %v1084_v55, 0.0  ;;  %2825 = vmatprep.subr.mxu0 %v3478_v21 }
 0xd8e   :  { %1087 = vadd.xlane.f32.xlu1 %v1086_v14 }
 0xd8f   :  { %v1085_v57 = vmul.f32 %v3673_v56, %v3673_v56 }
 0xd91   :  { %v1089_v45 = vsel %vm259_vm2, %v1085_v57, 0.0 }
 0xd92   :  { %1090 = vadd.xlane.f32.xlu0 %v1089_v45 }
 0xe17   :  { %v1088_v59 = vpop.xlane.xlu1 %1087 }
 0xe18   :  { %v1092_v60 = vmul.f32 0.03125, %v1088_v59 }
 0xe1a   :  { %v1094_v61 = vadd.f32 1e-06, %v1092_v60 }
 0xe1b   :  { %v1091_v62 = vpop.xlane.xlu0 %1090 }
 0xe1c   :  { %3070 = vrsqrt.f32 %v1094_v61  ;;  %v1093_v63 = vmul.f32 0.03125, %v1091_v62 }
 0xe1e   :  { %v1095_v3 = vadd.f32 1e-06, %v1093_v63 }
 0xe20   :  { %3072 = vrsqrt.f32 %v1095_v3 }
 0xe29   :  { %v3071_v4 = vpop.eup %3070 }
 0xe2a   :  { %v1098_v5 = vmul.f32 %v3071_v4, %v3668_v50 }
 0xe2c   :  { %v1106_v9 = vmul.f32 %v2536_v7, %v1098_v5 }
 0xe2d   :  { %v3073_v6 = vpop.eup %3072 }
 0xe2e   :  { %v1099_v8 = vmul.f32 %v3073_v6, %v3673_v56 }
 0xe30   :  { %v1107_v11 = vmul.f32 %v2536_v7, %v1099_v8 }
 0xe32   :  { %v1108_v12 = vpack.c.bf16 %v1107_v11, %v1106_v9 }
 0xe34   :  { %2822 = vmatmul.mubr.msk.bf16.vlgmr.msra.gmra.mxu0 %vm259_vm2, %v1108_v12 }
 0xe35   :  { %2826 = vmatpush3.msra.mxu0 %v3478_v21 }
 0xe36   :  { %2827 = vmatprep.subr.mxu0 %v3493_v36 }
 0xe37   :  { %2828 = vmatpush3.msra.mxu0 %v3493_v36 }
 0xe38   :  { %2829 = vmatprep.subr.mxu0 %v3500_v37 }
 0xe39   :  { %2830 = vmatpush3.msra.mxu0 %v3500_v37 }
 0xe3a   :  { %2831 = vmatprep.subr.mxu0 %v3507_v38 }
 0xe3b   :  { %2832 = vmatpush3.msra.mxu0 %v3507_v38 }
 0xe3c   :  { %2847 = vmatprep.subr.bf16.mxu0 %v3268_v0 }
 0xef4   :  { %v1171_v15 = vpop.f32.mrf.mxu0 }
 0xef5   :  { %v1172_v16 = vadd.f32 %v2541_v13, %v1171_v15 }
 0xef6   :  { %v2823_v17 = vpop.f32.mrf.mxu0 }
 0xef7   :  { %1267 = vrot.lane.b32.xlu0 %v1172_v16, %s3271_s5  ;;  %2833 = vmatprep.mubr.msk.f32.mxu0 %vm259_vm2, %v1172_v16  ;;  %v1178_v26 = vmul.f32 %v1172_v16, %v3473_v20  ;;  %v1265_v20 = vmul.f32 %v1172_v16, %v3556_v2 }
 0xef8   :  { %v1174_v21 = vpop.f32.mrf.mxu0 }
 0xef9   :  { %v1175_v36 = vadd.f32 %v2541_v13, %v1174_v21 }
 0xefa   :  { %v2824_v18 = vpop.f32.mrf.mxu0 }
 0xefb   :  { %1269 = vrot.lane.b32.xlu1 %v1175_v36, %s3271_s5  ;;  %2834 = vmatmul.mubr.msk.f32.vlgmr.msra.gmra.mxu0 %vm259_vm2, %v1175_v36  ;;  %v3705_v37 = vpack.c.bf16 %v1175_v36, %v1172_v16  ;;  %v1179_v25 = vmul.f32 %v1175_v36, %v3526_v46  ;;  %v1266_v46 = vmul.f32 %v1175_v36, %v3554_v1 }
 0xefc   :  { %2849 = vmatprep.mubr.msk.bf16.mxu0 %vm3269_vm0, %v3268_v0 }
 0xf69   :  { %v1268_v38 = vpop.permute.xlu0 %1267 }
 0xf6a   :  { %2844 = vmatprep.mubr.msk.f32.mxu1 %vm259_vm2, %v1268_v38 }
 0xf6d   :  { %v1270_v19 = vpop.permute.xlu1 %1269 }
 0xf6e   :  { %2845 = vmatmul.mubr.msk.f32.vlgmr.msra.gmra.mxu1 %vm259_vm2, %v1270_v19 }
 0xf6f   :  { %2855 = vmatprep.mubr.msk.bf16.mxu1 %vm3269_vm0, %v3268_v0 }
 0xfbb   :  { %v2835_v22 = vpop.f32.mrf.mxu0 }
 0xfbc   :  { %v1262_v23 = vmul.f32 %v2835_v22, %v3540_v49 }
 0xfbd   :  { %v1252_v24 = vpop.f32.mrf.mxu0 }
 0xfbe   :  { %v1261_v27 = vmul.f32 %v1252_v24, %v3542_v51  ;;  %v1264_v28 = vadd.f32 %v1262_v23, %v1179_v25 }
 0xfc0   :  { %v1263_v29 = vadd.f32 %v1261_v27, %v1178_v26 }
 0xfc2   :  { %v1362_v30 = vpack.c.bf16 %v1264_v28, %v1263_v29 }
0x102e   :  { %v2846_v31 = vpop.f32.mrf.mxu1 }
0x102f   :  { %v1351_v32 = vmul.f32 %v2846_v31, %v3540_v49 }
0x1030   :  { %v1341_v33 = vpop.f32.mrf.mxu1 }
0x1031   :  { %v1350_v34 = vmul.f32 %v1341_v33, %v3542_v51  ;;  %1356 = vrot.lane.b32.xlu0 %v1351_v32, %s3270_s23 }
0x1033   :  { %1354 = vrot.lane.b32.xlu1 %v1350_v34, %s3270_s23 }
0x10a3   :  { %v1357_v35 = vpop.permute.xlu0 %1356 }
0x10a4   :  { %v1361_v40 = vadd.f32 %v1357_v35, %v1266_v46 }
0x10a5   :  { %v1355_v39 = vpop.permute.xlu1 %1354 }
0x10a6   :  { %v1360_v42 = vadd.f32 %v1355_v39, %v1265_v20  ;;  %v3014_v39 = vld [vmem:[%s3946_s8 + $0x18] sm:$0xff]  }
0x10a8   :  { %v1363_v43 = vpack.c.bf16 %v1361_v40, %v1360_v42 }
0x10aa   :  { %1491 = vrot.lane.b32.xlu0 %v1363_v43, %s3274_s25  ;;  %1365 = vrot.lane.b32.xlu1 %v1363_v43, %s3271_s5  ;;  %v3015_v43 = vld [vmem:[%s3946_s8 + $0x10] sm:$0xff]  }
0x10ae   :  { %1489 = vrot.lane.b32.xlu1 %v1362_v30, %s3273_s29 }
0x111c   :  { %v1366_v49 = vpop.permute.xlu1 %1365  ;;  %v1492_v41 = vpop.permute.xlu0 %1491 }
0x111d   :  { %v1371_v51 = vsel %vm548_vm3, %v1366_v49, 0  ;;  %v1497_v1 = vsel %vm548_vm3, %v1492_v41, 0 }
0x111e   :  { %2848 = vmatpush3.bf16.xpose.msra.mxu0 %v1371_v51 }
0x111f   :  { %2859 = vmatprep.subr.bf16.mxu0 %v3268_v0 }
0x1120   :  { %v1490_v2 = vpop.permute.xlu1 %1489 }
0x1125   :  { %2850 = vmatmul.mubr.msk.bf16.vlgmr.msra.gmra.mxu0 %vm548_vm3, %v1362_v30 }
0x1126   :  { %2860 = vmatpush3.bf16.xpose.msra.mxu0 %v1497_v1  ;;  %2861 = vmatprep.mubr.msk.bf16.mxu0 %vm3269_vm0, %v3268_v0 }
0x1127   :  { %2871 = vmatprep.subr.bf16.mxu0 %v3268_v0 }
0x112d   :  { %2862 = vmatmul.mubr.msk.bf16.vlgmr.msra.gmra.mxu0 %vm548_vm3, %v1490_v2 }
0x112e   :  { %2875 = vmatprep.mubr.msk.bf16.mxu0 %vm3269_vm0, %v3268_v0  ;;  %2872 = vmatpush3.bf16.msra.mxu0 %v3014_v39 }
0x112f   :  { %2873 = vmatprep.subr.bf16.mxu0 %v3268_v0 }
0x1132   :  { %2874 = vmatpush3.bf16.msra.mxu0 %v3015_v43 }
0x1133   :  { %2887 = vmatprep.subr.bf16.mxu0 %v3268_v0 }
0x11e5   :  { %v1407_v44 = vpop.f32.mrf.mxu0 }
0x11e6   :  { %v1414_v47 = vmul.f32 0.25, %v1407_v44 }
0x11e7   :  { %v2851_v48 = vpop.f32.mrf.mxu0 }
0x11e8   :  { %v1416_v52 = vsel %vm548_vm3, %v1414_v47, -inf }
0x11e9   :  { %1417 = vmax.xlane.f32.xlu0 %v1416_v52  ;;  %v1410_v54 = vpop.f32.mrf.mxu0 }
0x11ea   :  { %v1415_v55 = vmul.f32 0.25, %v1410_v54 }
0x11eb   :  { %v2852_v10 = vpop.f32.mrf.mxu0 }
0x11ec   :  { %v1419_v14 = vsel %vm548_vm3, %v1415_v55, -inf }
0x11ed   :  { %1420 = vmax.xlane.f32.xlu1 %v1419_v14  ;;  %v1533_v57 = vpop.f32.mrf.mxu0 }
0x11ee   :  { %v1540_v45 = vmul.f32 0.25, %v1533_v57 }
0x11ef   :  { %v2863_v58 = vpop.f32.mrf.mxu0 }
0x11f0   :  { %v1542_v53 = vsel %vm548_vm3, %v1540_v45, -inf }
0x11f1   :  { %1543 = vmax.xlane.f32.xlu0 %v1542_v53  ;;  %v1536_v59 = vpop.f32.mrf.mxu0 }
0x11f2   :  { %v1541_v60 = vmul.f32 0.25, %v1536_v59 }
0x11f3   :  { %v2864_v61 = vpop.f32.mrf.mxu0 }
0x11f4   :  { %v1545_v62 = vsel %vm548_vm3, %v1541_v60, -inf }
0x11f5   :  { %1546 = vmax.xlane.f32.xlu0 %v1545_v62 }
0x1272   :  { %v1418_v63 = vpop.xlane.xlu0 %1417 }
0x1273   :  { %v1422_v3 = vsub.f32 %v1414_v47, %v1418_v63 }
0x1275   :  { %v1424_v4 = vmul.f32 1.442695, %v1422_v3 }
0x1276   :  { %v1421_v5 = vpop.xlane.xlu1 %1420 }
0x1277   :  { %3074 = vpow2.f32 %v1424_v4  ;;  %v1423_v6 = vsub.f32 %v1415_v55, %v1421_v5 }
0x1279   :  { %v1426_v7 = vmul.f32 1.442695, %v1423_v6  ;;  %v3016_v6 = vld [vmem:[%s3949_s11 + $0x18] sm:$0xff]  }
0x127a   :  { %v1544_v8 = vpop.xlane.xlu0 %1543 }
0x127b   :  { %3076 = vpow2.f32 %v1426_v7  ;;  %v1548_v9 = vsub.f32 %v1540_v45, %v1544_v8  ;;  %v2560_v45 = vld [vmem:[#allocation10 + $0x1] ss:$0 sm:$0xff] }
0x127d   :  { %v1550_v11 = vmul.f32 1.442695, %v1548_v9 }
0x127e   :  { %v1547_v12 = vpop.xlane.xlu0 %1546 }
0x127f   :  { %3078 = vpow2.f32 %v1550_v11  ;;  %v1549_v13 = vsub.f32 %v1541_v60, %v1547_v12 }
0x1281   :  { %v1552_v15 = vmul.f32 1.442695, %v1549_v13 }
0x1283   :  { %3080 = vpow2.f32 %v1552_v15 }
0x1284   :  { %v3075_v16 = vpop.eup %3074 }
0x1285   :  { %v1428_v17 = vsel %vm548_vm3, %v3075_v16, 0.0 }
0x1286   :  { %1429 = vadd.xlane.f32.xlu1 %v1428_v17 }
0x1288   :  { %v3077_v21 = vpop.eup %3076 }
0x1289   :  { %v1431_v36 = vsel %vm548_vm3, %v3077_v21, 0.0 }
0x128a   :  { %1432 = vadd.xlane.f32.xlu0 %v1431_v36 }
0x128c   :  { %v3079_v18 = vpop.eup %3078 }
0x128d   :  { %v1554_v38 = vsel %vm548_vm3, %v3079_v18, 0.0 }
0x128e   :  { %1555 = vadd.xlane.f32.xlu1 %v1554_v38 }
0x1290   :  { %v3081_v19 = vpop.eup %3080 }
0x1291   :  { %v1557_v22 = vsel %vm548_vm3, %v3081_v19, 0.0 }
0x1292   :  { %1558 = vadd.xlane.f32.xlu0 %v1557_v22  ;;  %v3018_v22 = vld [vmem:[%s3951_s13 + $0x38] sm:$0xff]  }
0x129f   :  { %1441 = vrot.lane.b32.xlu1 %v3705_v37, %s3272_s28 }
0x12a8   :  { %1565 = vrot.lane.b32.xlu0 %v3705_v37, %s3275_s9 }
0x130f   :  { %v1430_v23 = vpop.xlane.xlu1 %1429 }
0x1310   :  { %3082 = vrcp.f32 %v1430_v23  ;;  %v3019_v23 = vld [vmem:[%s3951_s13 + $0x30] sm:$0xff]  }
0x1313   :  { %v1433_v24 = vpop.xlane.xlu0 %1432 }
0x1314   :  { %3084 = vrcp.f32 %v1433_v24  ;;  %v3020_v24 = vld [vmem:[%s3951_s13 + $0x28] sm:$0xff]  }
0x1317   :  { %v1556_v25 = vpop.xlane.xlu1 %1555 }
0x1318   :  { %3086 = vrcp.f32 %v1556_v25  ;;  %v3021_v25 = vld [vmem:[%s3951_s13 + $0x20] sm:$0xff]  }
0x131b   :  { %v1442_v26 = vpop.permute.xlu1 %1441  ;;  %v1559_v27 = vpop.xlane.xlu0 %1558 }
0x131c   :  { %3088 = vrcp.f32 %v1559_v27  ;;  %2854 = vmatpush3.bf16.msra.mxu1 %v1442_v26  ;;  %v2567_v26 = vld [vmem:[%s3950_s12 + $0x1] ss:$0 sm:$0xff] }
0x131d   :  { %2865 = vmatprep.subr.bf16.mxu1 %v3268_v0  ;;  %v3083_v28 = vpop.eup %3082 }
0x131e   :  { %v1436_v30 = vmul.f32 %v3083_v28, %v3075_v16 }
0x131f   :  { %v1566_v33 = vpop.permute.xlu0 %1565 }
0x1321   :  { %v3085_v29 = vpop.eup %3084 }
0x1322   :  { %v1437_v31 = vmul.f32 %v3085_v29, %v3077_v21  ;;  %v2561_v21 = vld [vmem:[#allocation11 + $0x1] ss:$0 sm:$0xff] }
0x1324   :  { %v1438_v32 = vpack.c.bf16 %v1437_v31, %v1436_v30 }
0x1325   :  { %v3087_v37 = vpop.eup %3086 }
0x1326   :  { %2856 = vmatmul.mubr.msk.bf16.vlgmr.msra.gmra.mxu1 %vm548_vm3, %v1438_v32  ;;  %v1562_v35 = vmul.f32 %v3087_v37, %v3079_v18 }
0x1327   :  { %2866 = vmatpush3.bf16.msra.mxu1 %v1566_v33  ;;  %2867 = vmatprep.mubr.msk.bf16.mxu1 %vm3269_vm0, %v3268_v0 }
0x1328   :  { %2879 = vmatprep.subr.bf16.mxu1 %v3268_v0 }
0x1329   :  { %v3089_v34 = vpop.eup %3088 }
0x132a   :  { %v1563_v46 = vmul.f32 %v3089_v34, %v3081_v19 }
0x132c   :  { %v1564_v20 = vpack.c.bf16 %v1563_v46, %v1562_v35 }
0x132e   :  { %2868 = vmatmul.mubr.msk.bf16.vlgmr.msra.gmra.mxu1 %vm548_vm3, %v1564_v20 }
0x132f   :  { %2883 = vmatprep.mubr.msk.bf16.mxu1 %vm3269_vm0, %v3268_v0  ;;  %2880 = vmatpush3.bf16.msra.mxu1 %v3016_v6 }
0x1330   :  { %2881 = vmatprep.subr.bf16.mxu1 %v3268_v0 }
0x13e6   :  { %v1481_v40 = vpop.f32.mrf.mxu1 }
0x13e8   :  { %v2857_v42 = vpop.f32.mrf.mxu1 }
0x13ea   :  { %v1484_v49 = vpop.f32.mrf.mxu1 }
0x13ec   :  { %v2858_v51 = vpop.f32.mrf.mxu1 }
0x13ee   :  { %v1605_v41 = vpop.f32.mrf.mxu1 }
0x13f0   :  { %v2869_v1 = vpop.f32.mrf.mxu1 }
0x13f2   :  { %v1608_v2 = vpop.f32.mrf.mxu1 }
0x13f3   :  { %v2991_v44 = vpack.i.bf16 %v1608_v2, %v1605_v41 }
0x13f4   :  { %v2870_v47 = vpop.f32.mrf.mxu1 }
0x13f5   :  { %2992 = vrot.lane.b32.xlu1 %v2991_v44, %s3974_s4  ;;  %v2587_v47 = vld [vmem:[%s3952_s14 + $0x1] ss:$0 sm:$0xff] }
0x1467   :  { %v2993_v48 = vpop.permute.xlu1 %2992 }
0x1468   :  { %v2995_v52 = vunpack.i.h.bf16 %v2993_v48  ;;  %v2994_v54 = vunpack.i.l.bf16 %v2993_v48 }
0x146a   :  { %v1621_v55 = vsel %vm548_vm3, %v1484_v49, %v2995_v52  ;;  %v1620_v10 = vsel %vm548_vm3, %v1481_v40, %v2994_v54 }
0x146b   :  { %v1622_v14 = vpack.c.bf16 %v1621_v55, %v1620_v10 }
0x146d   :  { %2876 = vmatmul.mubr.msk.bf16.vlgmr.msra.gmra.mxu0 %vm259_vm2, %v1622_v14 }
0x146e   :  { %2895 = vmatprep.mubr.msk.bf16.mxu0 %vm3269_vm0, %v3268_v0  ;;  %2888 = vmatpush3.bf16.msra.mxu0 %v3018_v22  ;;  %v3029_v22 = vld [vmem:[%s3955_s17] sm:$0xff]  }
0x146f   :  { %2889 = vmatprep.subr.bf16.mxu0 %v3268_v0 }
0x1472   :  { %2890 = vmatpush3.bf16.msra.mxu0 %v3019_v23 }
0x1473   :  { %2891 = vmatprep.subr.bf16.mxu0 %v3268_v0 }
0x1476   :  { %2892 = vmatpush3.bf16.msra.mxu0 %v3020_v24 }
0x1477   :  { %2893 = vmatprep.subr.bf16.mxu0 %v3268_v0 }
0x147a   :  { %2894 = vmatpush3.bf16.msra.mxu0 %v3021_v25 }
0x147b   :  { %2927 = vmatprep.subr.bf16.mxu0 %v3268_v0 }
0x152d   :  { %v1677_v57 = vpop.f32.mrf.mxu0 }
0x152e   :  { %v1684_v58 = vadd.f32 %v1677_v57, %v3668_v50 }
0x152f   :  { %v2877_v53 = vpop.f32.mrf.mxu0 }
0x1530   :  { %v3771_v59 = vadd.f32 %v2560_v45, %v1684_v58 }
0x1531   :  { %v1680_v60 = vpop.f32.mrf.mxu0 }
0x1532   :  { %v1685_v61 = vadd.f32 %v1680_v60, %v3673_v56  ;;  %v1698_v62 = vmul.f32 %v3771_v59, %v3771_v59  ;;  %v3017_v56 = vld [vmem:[%s3949_s11 + $0x10] sm:$0xff]  }
0x1533   :  { %v2878_v63 = vpop.f32.mrf.mxu0  ;;  %2882 = vmatpush3.bf16.msra.mxu1 %v3017_v56 }
0x1534   :  { %v3776_v3 = vadd.f32 %v2560_v45, %v1685_v61  ;;  %v1700_v4 = vsel %vm259_vm2, %v1698_v62, 0.0  ;;  %2899 = vmatprep.subr.mxu1 %v3268_v0 }
0x1535   :  { %1701 = vadd.xlane.f32.xlu1 %v1700_v4 }
0x1536   :  { %v1699_v5 = vmul.f32 %v3776_v3, %v3776_v3 }
0x1538   :  { %v1703_v50 = vsel %vm259_vm2, %v1699_v5, 0.0 }
0x1539   :  { %1704 = vadd.xlane.f32.xlu0 %v1703_v50 }
0x15be   :  { %v1702_v7 = vpop.xlane.xlu1 %1701 }
0x15bf   :  { %v1706_v8 = vmul.f32 0.03125, %v1702_v7  ;;  %v2588_v7 = vld [vmem:[%s3954_s16] ss:$0 sm:$0xff] }
0x15c1   :  { %v1708_v9 = vadd.f32 1e-06, %v1706_v8 }
0x15c2   :  { %v1705_v11 = vpop.xlane.xlu0 %1704 }
0x15c3   :  { %3090 = vrsqrt.f32 %v1708_v9  ;;  %v1707_v12 = vmul.f32 0.03125, %v1705_v11  ;;  %v1931_v11 = vld [vmem:[%s3953_s15] sm:$0xf] }
0x15c5   :  { %v1709_v13 = vadd.f32 1e-06, %v1707_v12  ;;  %v2590_v12 = vld [vmem:[%s3953_s15 + $0x4] sm:$0xf] }
0x15c7   :  { %3092 = vrsqrt.f32 %v1709_v13  ;;  %v2592_v13 = vld [vmem:[%s3953_s15 + $0x8] sm:$0xf] }
0x15d0   :  { %v3091_v15 = vpop.eup %3090 }
0x15d1   :  { %v1712_v16 = vmul.f32 %v3091_v15, %v3771_v59  ;;  %v2594_v15 = vld [vmem:[%s3953_s15 + $0xc] sm:$0xf] }
0x15d3   :  { %v1720_v18 = vmul.f32 %v2561_v21, %v1712_v16  ;;  %v3022_v16 = vld [vmem:[%s3955_s17 + $0x38] sm:$0xff]  }
0x15d4   :  { %v3093_v17 = vpop.eup %3092 }
0x15d5   :  { %v1713_v36 = vmul.f32 %v3093_v17, %v3776_v3  ;;  %v3023_v17 = vld [vmem:[%s3955_s17 + $0x30] sm:$0xff]  }
0x15d7   :  { %v1721_v38 = vmul.f32 %v2561_v21, %v1713_v36  ;;  %v3024_v21 = vld [vmem:[%s3955_s17 + $0x28] sm:$0xff]   ;;  %v3025_v36 = vld [vmem:[%s3955_s17 + $0x20] sm:$0xff]  }
0x15d9   :  { %v1722_v19 = vpack.c.bf16 %v1721_v38, %v1720_v18  ;;  %v3026_v18 = vld [vmem:[%s3955_s17 + $0x18] sm:$0xff]   ;;  %v3027_v38 = vld [vmem:[%s3955_s17 + $0x10] sm:$0xff]  }
0x15db   :  { %2884 = vmatmul.mubr.msk.bf16.vlgmr.msra.gmra.mxu1 %vm259_vm2, %v1722_v19  ;;  %v3028_v19 = vld [vmem:[%s3955_s17 + $0x8] sm:$0xff]  }
0x15dc   :  { %2903 = vmatprep.mubr.msk.f32.mxu1 %vm3269_vm0, %v3268_v0 }
0x169b   :  { %v1785_v27 = vpop.f32.mrf.mxu1 }
0x169c   :  { %v1786_v28 = vadd.f32 %v2567_v26, %v1785_v27 }
0x169d   :  { %v2885_v29 = vpop.f32.mrf.mxu1 }
0x169e   :  { %1808 = vrot.lane.b32.xlu0 %v1786_v28, %s3272_s28  ;;  %v2571_v33 = vmul.f32 -1.442695, %v1786_v28 }
0x169f   :  { %v1788_v30 = vpop.f32.mrf.mxu1 }
0x16a0   :  { %v1789_v31 = vadd.f32 %v2567_v26, %v1788_v30  ;;  %3094 = vpow2.f32 %v2571_v33 }
0x16a1   :  { %v2886_v32 = vpop.f32.mrf.mxu1 }
0x16a2   :  { %1810 = vrot.lane.b32.xlu1 %v1789_v31, %s3272_s28  ;;  %v2572_v37 = vmul.f32 -1.442695, %v1789_v31 }
0x16a4   :  { %3096 = vpow2.f32 %v2572_v37 }
0x16ad   :  { %v3095_v34 = vpop.eup %3094 }
0x16ae   :  { %v1798_v46 = vadd.f32 1.0, %v3095_v34 }
0x16b0   :  { %3098 = vrcp.f32 %v1798_v46 }
0x16b1   :  { %v3097_v35 = vpop.eup %3096 }
0x16b2   :  { %v1799_v20 = vadd.f32 1.0, %v3097_v35 }
0x16b4   :  { %3100 = vrcp.f32 %v1799_v20  ;;  %v3030_v20 = vld [vmem:[%s3957_s19 + $0x38] sm:$0xff]  }
0x16bd   :  { %v3099_v39 = vpop.eup %3098 }
0x16be   :  { %v1804_v43 = vmul.f32 %v3099_v39, %v1786_v28  ;;  %v3031_v39 = vld [vmem:[%s3957_s19 + $0x30] sm:$0xff]  }
0x16c1   :  { %v3101_v40 = vpop.eup %3100 }
0x16c2   :  { %v1805_v49 = vmul.f32 %v3101_v40, %v1789_v31  ;;  %v3032_v40 = vld [vmem:[%s3957_s19 + $0x28] sm:$0xff]  }
0x1710   :  { %v1809_v42 = vpop.permute.xlu0 %1808 }
0x1711   :  { %v1814_v41 = vmul.f32 %v1809_v42, %v1804_v43  ;;  %v3033_v42 = vld [vmem:[%s3957_s19 + $0x20] sm:$0xff]   ;;  %v3034_v43 = vld [vmem:[%s3957_s19 + $0x18] sm:$0xff]  }
0x1714   :  { %v1811_v51 = vpop.permute.xlu1 %1810 }
0x1715   :  { %v1815_v1 = vmul.f32 %v1811_v51, %v1805_v49  ;;  %v3035_v49 = vld [vmem:[%s3957_s19 + $0x10] sm:$0xff]   ;;  %v3036_v51 = vld [vmem:[%s3957_s19 + $0x8] sm:$0xff]  }
0x1717   :  { %v1816_v2 = vpack.c.bf16 %v1815_v1, %v1814_v41  ;;  %v3037_v41 = vld [vmem:[%s3957_s19] sm:$0xff]  }
0x1718   :  { %v2596_v1 = vld [vmem:[%s3956_s18] ss:$0 sm:$0xff]  ;;  %s3276_s18 = smov [#allocation13]  }
0x1719   :  { %2896 = vmatmul.mubr.msk.bf16.vlgmr.msra.gmra.mxu0 %vm1026_vm4, %v1816_v2  ;;  %s2486_s27 = sshll.u32 %s3276_s18, 4  ;;  %s2487_s27 = int_to_ptr.vmem [resolvable:$true] %s2486_s27 }
0x171a   :  { %2943 = vmatprep.mubr.msk.bf16.mxu0 %vm3269_vm0, %v3268_v0  ;;  %2928 = vmatpush3.bf16.msra.mxu0 %v3022_v16  ;;  %s3228_s24 = scalar_lea.vmem %s2487_s27, 64  ;;  %p3233_p3 = scmp.lt.s32.totalorder %s2487_s27, %s2487_s27 }
0x171b   :  { %2929 = vmatprep.subr.bf16.mxu0 %v3268_v0  ;;  %p3229_p2 = scmp.ne.s32.totalorder %s2487_s27, %s3228_s24  ;;  %p3234_p4 = scmp.lt.s32.totalorder %s3228_s24, %s3228_s24 }
0x171d   :  { %p3235_p5 = por %p3234_p4, %p3233_p3 }
0x171e   :  { %2930 = vmatpush3.bf16.msra.mxu0 %v3023_v17 }
0x171f   :  { %2931 = vmatprep.subr.bf16.mxu0 %v3268_v0  ;;  %p3236_p6 = pnand %p3235_p5, %p3229_p2 }
0x1722   :  { %2932 = vmatpush3.bf16.msra.mxu0 %v3024_v21 }
0x1723   :  { %2933 = vmatprep.subr.bf16.mxu0 %v3268_v0 }
0x1726   :  { %2934 = vmatpush3.bf16.msra.mxu0 %v3025_v36 }
0x1727   :  { %2935 = vmatprep.subr.bf16.mxu0 %v3268_v0 }
0x172a   :  { %2936 = vmatpush3.bf16.msra.mxu0 %v3026_v18 }
0x172b   :  { %2937 = vmatprep.subr.bf16.mxu0 %v3268_v0 }
0x172e   :  { %2938 = vmatpush3.bf16.msra.mxu0 %v3027_v38 }
0x172f   :  { %2939 = vmatprep.subr.bf16.mxu0 %v3268_v0 }
0x1732   :  { %2940 = vmatpush3.bf16.msra.mxu0 %v3028_v19 }
0x1733   :  { %2941 = vmatprep.subr.bf16.mxu0 %v3268_v0 }
0x1736   :  { %2942 = vmatpush3.bf16.msra.mxu0 %v3029_v22 }
0x17d9   :  { %v1887_v44 = vpop.f32.mrf.mxu0 }
0x17da   :  { %v1894_v48 = vadd.f32 %v1887_v44, %v3771_v59 }
0x17db   :  { %v2897_v52 = vpop.f32.mrf.mxu0 }
0x17dc   :  { %v1904_v54 = vadd.f32 %v2587_v47, %v1894_v48 }
0x17dd   :  { %v1890_v55 = vpop.f32.mrf.mxu0 }
0x17de   :  { %v1895_v10 = vadd.f32 %v1890_v55, %v3776_v3  ;;  %v1907_v14 = vmul.f32 %v1904_v54, %v1904_v54 }
0x17df   :  { %v2898_v57 = vpop.f32.mrf.mxu0 }
0x17e0   :  { %v1905_v45 = vadd.f32 %v2587_v47, %v1895_v10  ;;  %v1909_v58 = vsel %vm259_vm2, %v1907_v14, 0.0 }
0x17e1   :  { %1910 = vadd.xlane.f32.xlu0 %v1909_v58 }
0x17e2   :  { %v1908_v53 = vmul.f32 %v1905_v45, %v1905_v45 }
0x17e4   :  { %v1912_v60 = vsel %vm259_vm2, %v1908_v53, 0.0 }
0x17e5   :  { %1913 = vadd.xlane.f32.xlu1 %v1912_v60 }
0x186a   :  { %v1911_v61 = vpop.xlane.xlu0 %1910 }
0x186b   :  { %v1915_v62 = vmul.f32 0.03125, %v1911_v61  ;;  %v2605_v61 = vld [vmem:[%s3958_s20] ss:$0 sm:$0xff] }
0x186d   :  { %v1917_v63 = vadd.f32 1e-06, %v1915_v62 }
0x186e   :  { %v1914_v4 = vpop.xlane.xlu1 %1913 }
0x186f   :  { %v1916_v59 = vmul.f32 0.03125, %v1914_v4  ;;  %3102 = vrsqrt.f32 %v1917_v63 }
0x1871   :  { %v1918_v5 = vadd.f32 1e-06, %v1916_v59 }
0x1873   :  { %3104 = vrsqrt.f32 %v1918_v5 }
0x187c   :  { %v3103_v50 = vpop.eup %3102 }
0x187d   :  { %v1921_v56 = vmul.f32 %v3103_v50, %v1904_v54 }
0x187f   :  { %v1929_v9 = vmul.f32 %v2588_v7, %v1921_v56 }
0x1880   :  { %v3105_v3 = vpop.eup %3104 }
0x1881   :  { %v1922_v6 = vmul.f32 %v3105_v3, %v1905_v45 }
0x1883   :  { %v1930_v8 = vmul.f32 %v2588_v7, %v1922_v6 }
0x1885   :  { %2900 = vmatpush3.msra.mxu1 %v1930_v8 }
0x1886   :  { %2901 = vmatprep.subr.mxu1 %v3268_v0 }
0x1887   :  { %2902 = vmatpush3.msra.mxu1 %v1929_v9 }
0x1888   :  { %2904 = vmatmul.mubr.msk.f32.vlgmr.msra.gmra.mxu1 %vm548_vm3, %v1931_v11  ;;  %2906 = vmatprep.subr.mxu1 %v3268_v0 }
0x1889   :  { %2907 = vmatpush3.msra.mxu1 %v1930_v8  ;;  %2910 = vmatprep.mubr.msk.f32.mxu1 %vm3269_vm0, %v3268_v0 }
0x188a   :  { %2908 = vmatprep.subr.mxu1 %v3268_v0 }
0x188b   :  { %2909 = vmatpush3.msra.mxu1 %v1929_v9 }
0x188c   :  { %2911 = vmatmul.mubr.msk.f32.vlgmr.msra.gmra.mxu1 %vm548_vm3, %v2590_v12  ;;  %2913 = vmatprep.subr.mxu1 %v3268_v0 }
0x188d   :  { %2914 = vmatpush3.msra.mxu1 %v1930_v8  ;;  %2917 = vmatprep.mubr.msk.f32.mxu1 %vm3269_vm0, %v3268_v0 }
0x188e   :  { %2915 = vmatprep.subr.mxu1 %v3268_v0 }
0x188f   :  { %2916 = vmatpush3.msra.mxu1 %v1929_v9 }
0x1890   :  { %2918 = vmatmul.mubr.msk.f32.vlgmr.msra.gmra.mxu1 %vm548_vm3, %v2592_v13  ;;  %2920 = vmatprep.subr.mxu1 %v3268_v0 }
0x1891   :  { %2921 = vmatpush3.msra.mxu1 %v1930_v8  ;;  %2924 = vmatprep.mubr.msk.f32.mxu1 %vm3269_vm0, %v3268_v0 }
0x1892   :  { %2922 = vmatprep.subr.mxu1 %v3268_v0 }
0x1893   :  { %2923 = vmatpush3.msra.mxu1 %v1929_v9 }
0x1894   :  { %2925 = vmatmul.mubr.msk.f32.vlgmr.msra.gmra.mxu1 %vm548_vm3, %v2594_v15  ;;  %2947 = vmatprep.subr.bf16.mxu1 %v3268_v0 }
0x1895   :  { %2963 = vmatprep.mubr.msk.bf16.mxu1 %vm3269_vm0, %v3268_v0  ;;  %2948 = vmatpush3.bf16.msra.mxu1 %v3030_v20 }
0x1896   :  { %2949 = vmatprep.subr.bf16.mxu1 %v3268_v0 }
0x1899   :  { %2950 = vmatpush3.bf16.msra.mxu1 %v3031_v39 }
0x189a   :  { %2951 = vmatprep.subr.bf16.mxu1 %v3268_v0 }
0x189d   :  { %2952 = vmatpush3.bf16.msra.mxu1 %v3032_v40 }
0x189e   :  { %2953 = vmatprep.subr.bf16.mxu1 %v3268_v0 }
0x18a1   :  { %2954 = vmatpush3.bf16.msra.mxu1 %v3033_v42 }
0x18a2   :  { %2955 = vmatprep.subr.bf16.mxu1 %v3268_v0 }
0x18a5   :  { %2956 = vmatpush3.bf16.msra.mxu1 %v3034_v43 }
0x18a6   :  { %2957 = vmatprep.subr.bf16.mxu1 %v3268_v0 }
0x18a9   :  { %2958 = vmatpush3.bf16.msra.mxu1 %v3035_v49 }
0x18aa   :  { %2959 = vmatprep.subr.bf16.mxu1 %v3268_v0 }
0x18ad   :  { %2960 = vmatpush3.bf16.msra.mxu1 %v3036_v51 }
0x18ae   :  { %2961 = vmatprep.subr.bf16.mxu1 %v3268_v0 }
0x18b1   :  { %2962 = vmatpush3.bf16.msra.mxu1 %v3037_v41 }
0x1948   :  { %v2001_v23 = vpop.f32.mrf.mxu1 }
0x194a   :  { %v2905_v24 = vpop.f32.mrf.mxu1 }
0x194c   :  { %v2076_v25 = vpop.f32.mrf.mxu1 }
0x194d   :  { %2231 = vrot.lane.b32.xlu0 %v2076_v25, %s3270_s23 }
0x194e   :  { %v2912_v26 = vpop.f32.mrf.mxu1 }
0x1950   :  { %v2151_v27 = vpop.f32.mrf.mxu1 }
0x1951   :  { %2235 = vrot.lane.b32.xlu1 %v2151_v27, %s3272_s28 }
0x1952   :  { %v2919_v28 = vpop.f32.mrf.mxu1 }
0x1954   :  { %v2226_v29 = vpop.f32.mrf.mxu1 }
0x1955   :  { %2239 = vrot.lane.b32.xlu1 %v2226_v29, %s3271_s5 }
0x1956   :  { %v2926_v30 = vpop.f32.mrf.mxu1 }
0x19bf   :  { %v2232_v31 = vpop.permute.xlu0 %2231 }
0x19c0   :  { %v2242_v33 = vsel %vm259_vm2, %v2001_v23, %v2232_v31 }
0x19c3   :  { %v2236_v32 = vpop.permute.xlu1 %2235 }
0x19c4   :  { %v2243_v37 = vsel %vm1026_vm4, %v2242_v33, %v2236_v32 }
0x19c7   :  { %v2240_v34 = vpop.permute.xlu1 %2239 }
0x19c8   :  { %v2244_v35 = vsel %vm203_vm1, %v2243_v37, %v2240_v34 }
0x19c9   :  { %v2245_v46 = vpack.c.bf16 %v2244_v35, %v2244_v35 }
0x19cb   :  { %2944 = vmatmul.mubr.bf16.vlgmr.msra.gmra.mxu0 %v2245_v46 }
0x1a8b   :  { %v2351_v2 = vpop.f32.mrf.mxu0 }
0x1a8c   :  { %v2352_v44 = vadd.f32 %v2596_v1, %v2351_v2 }
0x1a8d   :  { %v2945_v47 = vpop.f32.mrf.mxu0 }
0x1a8e   :  { %v2358_v48 = vmul.f32 0.044715, %v2352_v44  ;;  %v2357_v58 = vmul.f32 0.5, %v2352_v44 }
0x1a8f   :  { %v2354_v52 = vpop.f32.mrf.mxu0 }
0x1a90   :  { %v2359_v54 = vmul.f32 %v2358_v48, %v2352_v44 }
0x1a91   :  { %v2946_v55 = vpop.f32.mrf.mxu0 }
0x1a92   :  { %v2360_v10 = vmul.f32 %v2359_v54, %v2352_v44 }
0x1a94   :  { %v2361_v14 = vadd.f32 %v2360_v10, %v2352_v44 }
0x1a96   :  { %v2362_v57 = vmul.f32 0.7978846, %v2361_v14 }
0x1a98   :  { %3106 = vtanh.f32 %v2362_v57 }
0x1aa5   :  { %v3107_v45 = vpop.eup %3106 }
0x1aa6   :  { %v2364_v53 = vadd.f32 1.0, %v3107_v45 }
0x1aa8   :  { %v2365_v0 = vmul.f32 %v2364_v53, %v2357_v58 }
0x1aaa   :  { %v2366_v60 = vpack.c.bf16 %v2365_v0, %v2365_v0 }
0x1aac   :  { %2964 = vmatmul.mubr.bf16.vlgmr.msra.gmra.mxu1 %v2366_v60 }
0x1b6c   :  { %v2472_v62 = vpop.f32.mrf.mxu1 }
0x1b6d   :  { %v2473_v63 = vadd.f32 %v2605_v61, %v2472_v62 }
0x1b6e   :  { %v2965_v4 = vpop.f32.mrf.mxu1 }
0x1b6f   :  { %2479 = vst.msk [vmem:[#allocation13] sm:$0xf] %vm2478_vm5, %v2473_v63 }
0x1b70   :  { %v2475_v59 = vpop.f32.mrf.mxu1 }
0x1b71   :  { %3239 = shalt.err (!%p3236_p6)
}
0x1b72   :  { %2489 = dma.vmem_to_hbm [thread:$0]  %s2487_s27, 64, %s3959_s21, [#allocation4]   ;;  %v2966_v5 = vpop.f32.mrf.mxu1 }
0x1b73   :  { %3256 = dma.done.wait [#allocation4], 64  }
0x1b74   :  { %3257 = vsyncadd [#allocation4], 4294967232 }
0x1b75   :  { %2493 = vsyncpa [#allocation3], 1 }
0x1b76   :  { %2494 = vsyncpa [#allocation6], 1 }
0x1b77   :  { %2495 = vsyncpa [#allocation9], 1 }
0x1b78   :  { %2496 = vsyncpa [#allocation12], 1 }
0x1b79   :  { %2497 = vsyncpa [#allocation4], 1 }

</bundles_post_ra>
